<compile_context>
chip_gen: v6e
topology: v6e:2x2x1
jax: 0.10.0
libtpu: 0.0.40
codegen_flags: <defaults>
</compile_context>

<pallas_src>
import math

import jax
import jax.numpy as jnp
import numpy as np
from jax.experimental import pallas as pl
from jax.experimental.pallas import tpu as pltpu


def _cdiv(a, b):
    return -(-a // b)


def _round_up(a, b):
    return _cdiv(a, b) * b


def _lcm(a, b):
    return a * b // math.gcd(a, b)


# ----------------------------------------------------------------------------
# Guarded hardware queries (generation-aware tiling / splitting)
# ----------------------------------------------------------------------------
def _vmem_capacity_bytes():
    try:
        info = pltpu.get_tpu_info()
        cap = int(getattr(info, "vmem_capacity_bytes", 0))
        if cap > 0:
            return cap
    except Exception:
        pass
    return 64 << 20  # conservative default = v7x per-TensorCore VMEM


def _num_tensorcores():
    try:
        dev = jax.devices()[0]
        n = getattr(dev, "num_cores", None)
        if n:
            return int(n)
        kind = str(getattr(dev, "device_kind", "")).lower()
        if "v7" in kind or "7x" in kind:
            return 2
    except Exception:
        pass
    return 1


# ----------------------------------------------------------------------------
# Pallas kernels (operate on lane-flattened (rows, lane_width) tiles)
# ----------------------------------------------------------------------------
def _abs_kernel(d_ref, t_ref, abs_ref):
    """Per-lane sum over rows of |data - target| (hard=True / no categorical)."""
    @pl.when(pl.program_id(1) == 0)
    def _():
        abs_ref[...] = jnp.zeros_like(abs_ref)

    d = d_ref[...].astype(jnp.float32)
    t = t_ref[...].astype(jnp.float32)
    abs_ref[...] += jnp.sum(jnp.abs(d - t), axis=0,
                            keepdims=True).reshape(abs_ref.shape)


def _make_abs_sel_kernel(d_per, lane_width, groups):
    """Per-lane |data-target| sums + fused per-group argmax-selection sums."""
    bounds = [(min(g), max(g), list(g)) for g in groups]

    def kernel(d_ref, t_ref, abs_ref, sel_ref):
        @pl.when(pl.program_id(1) == 0)
        def _():
            abs_ref[...] = jnp.zeros_like(abs_ref)
            sel_ref[...] = jnp.zeros_like(sel_ref)

        d = d_ref[...].astype(jnp.float32)        # (rows, lane_width)
        t = t_ref[...].astype(jnp.float32)

        abs_ref[...] += jnp.sum(jnp.abs(d - t), axis=0,
                                keepdims=True).reshape(abs_ref.shape)

        # Original column id of every lane (flatten packs `fold` rows per
        # flattened row, so column = lane % d_per).
        col = jax.lax.broadcasted_iota(jnp.int32, (1, lane_width), 1) % d_per
        neg = jnp.float32(-3.0e38)

        total_mask = None
        for lo, hi, cols in bounds:
            if hi - lo + 1 == len(cols):           # contiguous group
                gmask = (col >= lo) & (col <= hi)
            else:
                gmask = col == cols[0]
                for c in cols[1:]:
                    gmask = gmask | (col == c)
            u = jnp.where(gmask, t, neg)
            # Per-segment group max via lane rotations.  Both rotation
            # directions (shift = delta and lane_width - delta) are taken, so
            # the result does not depend on the rotation sign convention, and
            # d_per >= 2*span-1 guarantees no cross-segment contamination.
            gmax = u
            for delta in range(1, hi - lo + 1):
                gmax = jnp.maximum(gmax, pltpu.roll(u, shift=delta, axis=1))
                gmax = jnp.maximum(gmax,
                                   pltpu.roll(u, shift=lane_width - delta, axis=1))
            # TODO(synk): exact ties inside a categorical target group select
            # every tied column; torch.argmax picks only the first occurrence.
            m = jnp.where(gmask & (t >= gmax), 1.0, 0.0)
            total_mask = m if total_mask is None else total_mask + m

        sel_ref[...] += jnp.sum(d * total_mask, axis=0,
                                keepdims=True).reshape(sel_ref.shape)

    return kernel


# ----------------------------------------------------------------------------
# Wrapper: lane-flatten, tiling, pallas_call, fold back to per-column sums
# ----------------------------------------------------------------------------
def _column_sums(data, target, groups):
    """Per-original-column batch sums.

    Returns (abs_sums, sel_sums), each of shape (d_pad,) float32:
      abs_sums[c] = sum_b |data[b,c] - target[b,c]|
      sel_sums[c] = sum_b data[b,c] * onehot(argmax_target within c's group)
    (sel_sums is None when `groups` is empty).  Assumes groups are disjoint.
    """
    B, D = data.shape
    need_sel = len(groups) > 0

    # Column padding keeps the in-kernel rotation window inside one segment.
    d_pad = D
    if need_sel:
        max_span = max(max(g) - min(g) + 1 for g in groups)
        d_pad = max(D, 2 * max_span - 1)
    lane_width = _lcm(d_pad, 128)          # lane-dense flattened row width
    fold = lane_width // d_pad             # original rows packed per flat row

    vmem_cap = _vmem_capacity_bytes()
    num_tc = _num_tensorcores()

    row_bytes = lane_width * (jnp.dtype(data.dtype).itemsize
                              + jnp.dtype(target.dtype).itemsize)

    rows_needed = _cdiv(B, fold)
    num_splits = 2 if (num_tc >= 2 and rows_needed >= 512) else 1
    per_split = _cdiv(rows_needed, num_splits)

    # Tile sizing: >= ~1 MiB per stream per step to amortize grid overhead,
    # bounded so double-buffered inputs + in-kernel temporaries fit VMEM on
    # every generation (v7x has only 64 MiB per TensorCore).
    max_rows = 1024 if need_sel else 2048
    budget_rows = max(32, min(vmem_cap // 4, 24 << 20) // (2 * row_bytes))
    tile_cap = max(32, min(max_rows, int(budget_rows)))
    steps = _cdiv(per_split, tile_cap)
    tile_rows = _round_up(_cdiv(per_split, steps), 32)
    rows_pad = num_splits * steps * tile_rows
    b_pad = rows_pad * fold

    def prep(x):
        if b_pad != B or d_pad != D:
            x = jnp.pad(x, ((0, b_pad - B), (0, d_pad - D)))  # zeros add 0
        return x.reshape(rows_pad, lane_width)   # row-major contiguous => free

    d_flat, t_flat = prep(data), prep(target)

    in_spec = pl.BlockSpec((tile_rows, lane_width), lambda s, i: (s * steps + i, 0))
    out_spec = pl.BlockSpec((1, 1, lane_width), lambda s, i: (s, 0, 0))
    out_sds = jax.ShapeDtypeStruct((num_splits, 1, lane_width), jnp.float32)

    n_out = 2 if need_sel else 1
    cost = pl.CostEstimate(
        flops=int(rows_pad * lane_width * (4 + (8 * len(groups) if need_sel else 0))),
        transcendentals=0,
        bytes_accessed=int(d_flat.size * d_flat.dtype.itemsize
                           + t_flat.size * t_flat.dtype.itemsize
                           + n_out * num_splits * lane_width * 4))

    cparams = pltpu.CompilerParams(
        dimension_semantics=("parallel", "arbitrary"),
        vmem_limit_bytes=int(min(max(32 << 20, vmem_cap * 5 // 8), 96 << 20)))

    grid = (num_splits, steps)
    if need_sel:
        abs_sums, sel_sums = pl.pallas_call(
            _make_abs_sel_kernel(d_pad, lane_width, groups),
            out_shape=(out_sds, out_sds),
            grid_spec=pltpu.PrefetchScalarGridSpec(
                num_scalar_prefetch=0, grid=grid,
                in_specs=[in_spec, in_spec],
                out_specs=[out_spec, out_spec]),
            compiler_params=cparams,
            cost_estimate=cost,
        )(d_flat, t_flat)
    else:
        abs_sums = pl.pallas_call(
            _abs_kernel,
            out_shape=out_sds,
            grid_spec=pltpu.PrefetchScalarGridSpec(
                num_scalar_prefetch=0, grid=grid,
                in_specs=[in_spec, in_spec],
                out_specs=out_spec),
            compiler_params=cparams,
            cost_estimate=cost,
        )(d_flat, t_flat)
        sel_sums = None

    def fold_cols(s):
        return s.sum(axis=(0, 1)).reshape(fold, d_pad).sum(axis=0)  # (d_pad,)

    return fold_cols(abs_sums), (None if sel_sums is None else fold_cols(sel_sums))


# ----------------------------------------------------------------------------
# DamageAttributeLoss (both hard=False and hard=True paths)
# ----------------------------------------------------------------------------
class DamageAttributeLossPallas:
    """Per-attribute loss vector: per-numerical-column L1 mean, plus one scalar
    per categorical one-hot group (1 - accuracy for hard=False; proportion of
    column-wise L1 mistakes for hard=True).  Mirrors DamageAttributeLoss.forward;
    disc_pred / disc_target / group extra args are ignored, as in the original."""

    def __init__(self, categorical_indexes, numerical_indexes, hard=False,
                 *args, **kwargs):
        self.cat_indexes = [list(c) for c in categorical_indexes]
        self.num_indexes = list(numerical_indexes)
        self.hard = bool(hard)
        self._fwd = jax.jit(self._forward)

    def _forward(self, data_, data_target):
        B, _ = data_.shape
        groups = [] if self.hard else self.cat_indexes
        abs_sums, sel_sums = _column_sums(data_, data_target, groups)
        inv_b = jnp.float32(1.0 / B)
        absmean = abs_sums * inv_b
        selmean = None if sel_sums is None else sel_sums * inv_b

        parts = []
        if self.num_indexes:
            parts.append(absmean[jnp.asarray(self.num_indexes, jnp.int32)])
        for c in self.cat_indexes:
            c_arr = jnp.asarray(c, jnp.int32)
            if self.hard:
                # hard_categorical: per-column L1 means, sum / #nonzero columns
                all_wrong = absmean[c_arr]
                denom = jnp.sum(all_wrong != 0).astype(jnp.float32)
                denom = jnp.where(denom == 0, jnp.float32(1.0), denom)
                l = jnp.sum(all_wrong) / denom
            else:
                # AccuracyLoss: 1 - mean_b data[b, argmax_b(target group)]
                l = 1.0 - jnp.sum(selmean[c_arr])
            parts.append(jnp.reshape(l, (1,)))

        if not parts:
            return jnp.zeros((0,), jnp.float32)
        return jnp.concatenate(parts, axis=0)

    def __call__(self, data_, data_target, *args, **kwargs):
        return self._fwd(data_, data_target)


# ----------------------------------------------------------------------------
# Pure-JAX reference (mirrors the PyTorch forward) + self-test
# ----------------------------------------------------------------------------
def _reference(data_, data_target, cat_indexes, num_indexes, hard=False):
    parts = []
    if len(num_indexes) > 0:
        num_arr = jnp.asarray(num_indexes, jnp.int32)
        rec = jnp.mean(jnp.abs(data_[:, num_arr] - data_target[:, num_arr]), axis=0)
        parts.append(rec.reshape(-1))
    for c in cat_indexes:
        c_arr = jnp.asarray(c, jnp.int32)
        if hard:
            all_wrong = jnp.mean(jnp.abs(data_[:, c_arr] - data_target[:, c_arr]), axis=0)
            denom = jnp.sum(all_wrong != 0).astype(jnp.float32)
            denom = jnp.where(denom == 0, jnp.float32(1.0), denom)
            parts.append(jnp.reshape(jnp.sum(all_wrong) / denom, (1,)))
        else:
            tgt = jnp.argmax(data_target[:, c_arr], axis=1)
            sel = data_[:, c_arr][jnp.arange(data_.shape[0]), tgt]
            parts.append(jnp.reshape(1.0 - jnp.mean(sel), (1,)))
    return jnp.concatenate(parts, axis=0)


def _make_inputs(key, B, D, num_indexes, cat_indexes):
    ks = jax.random.split(key, 2 + len(cat_indexes))
    data_ = jax.random.uniform(ks[0], (B, D), dtype=jnp.float32)
    data_target = jnp.zeros((B, D), jnp.float32)
    if num_indexes:
        data_target = data_target.at[:, jnp.asarray(num_indexes)].set(
            jax.random.uniform(ks[1], (B, len(num_indexes)), dtype=jnp.float32))
    for c, kk in zip(cat_indexes, ks[2:]):
        cls = jax.random.randint(kk, (B,), 0, len(c))
        data_target = data_target.at[:, jnp.asarray(c)].set(
            jax.nn.one_hot(cls, len(c), dtype=jnp.float32))
    return data_, data_target


if __name__ == "__main__":
    num_indexes = [0, 1, 2, 3]                     # 4 numerical columns
    cat_indexes = [[4, 5, 6], [7, 8, 9, 10, 11]]   # 3-way and 5-way one-hot groups
    D = 12

    key = jax.random.PRNGKey(0)
    keys = jax.random.split(key, 3)

    # B=50: row-padding path.  B=4096: pad-free reshape, single step.
    # B=70000: multi-step accumulation (and 2-way split on dual-TC chips).
    for B, kk in zip((50, 4096, 70000), keys):
        data_, data_target = _make_inputs(kk, B, D, num_indexes, cat_indexes)
        for hard in (False, True):
            loss_mod = DamageAttributeLossPallas(cat_indexes, num_indexes, hard=hard)
            got = jax.block_until_ready(loss_mod(data_, data_target))
            ref = _reference(data_, data_target, cat_indexes, num_indexes, hard=hard)
            np.testing.assert_allclose(np.asarray(got), np.asarray(ref),
                                       rtol=1e-4, atol=1e-5)

    print("KERNEL_OK")
</pallas_src>

<mosaic_0001>
module attributes {stable_mosaic.version = 11 : i64} {
  func.func @kernel(%arg0: i32, %arg1: i32, %arg2: memref<32x384xf32, #tpu.memory_space<vmem>>, %arg3: memref<32x384xf32, #tpu.memory_space<vmem>>, %arg4: memref<1x1x384xf32, #tpu.memory_space<vmem>>, %arg5: memref<1x1x384xf32, #tpu.memory_space<vmem>>) attributes {dimension_semantics = [#tpu.dimension_semantics<parallel>, #tpu.dimension_semantics<arbitrary>], iteration_bounds = array<i64: 1, 1>, scalar_prefetch = 0 : i64, scratch_operands = 0 : i64, tpu.core_type = #tpu.core_type<tc>, window_params = [{transform_indices = @transform_0, window_bounds = array<i64: 32, 384>}, {transform_indices = @transform_1, window_bounds = array<i64: 32, 384>}, {transform_indices = @transform_2, window_bounds = array<i64: 1, 1, 384>}, {transform_indices = @transform_3, window_bounds = array<i64: 1, 1, 384>}]} {
    %c0_i32 = arith.constant 0 : i32
    %0 = arith.cmpi eq, %arg1, %c0_i32 : i32
    %1 = arith.extui %0 : i1 to i32
    %c0_i32_0 = arith.constant 0 : i32
    %2 = arith.cmpi ne, %1, %c0_i32_0 : i32
    scf.if %2 {
      %cst_33 = arith.constant 0.000000e+00 : f32
      %92 = vector.broadcast %cst_33 : f32 to vector<1x1x384xf32>
      %c0_34 = arith.constant 0 : index
      %c0_35 = arith.constant 0 : index
      %c0_36 = arith.constant 0 : index
      %93 = vector.load %arg4[%c0_34, %c0_35, %c0_36] : memref<1x1x384xf32, #tpu.memory_space<vmem>>, vector<1x1x384xf32>
      tpu.vector_store %arg4[%c0_34, %c0_35, %c0_36], %92 {strides = array<i32>} : memref<1x1x384xf32, #tpu.memory_space<vmem>>, vector<1x1x384xf32>,
      %cst_37 = arith.constant 0.000000e+00 : f32
      %94 = vector.broadcast %cst_37 : f32 to vector<1x1x384xf32>
      %c0_38 = arith.constant 0 : index
      %c0_39 = arith.constant 0 : index
      %c0_40 = arith.constant 0 : index
      %95 = vector.load %arg5[%c0_38, %c0_39, %c0_40] : memref<1x1x384xf32, #tpu.memory_space<vmem>>, vector<1x1x384xf32>
      tpu.vector_store %arg5[%c0_38, %c0_39, %c0_40], %94 {strides = array<i32>} : memref<1x1x384xf32, #tpu.memory_space<vmem>>, vector<1x1x384xf32>,
    } else {
    }
    %c0 = arith.constant 0 : index
    %c0_1 = arith.constant 0 : index
    %3 = vector.load %arg2[%c0, %c0_1] : memref<32x384xf32, #tpu.memory_space<vmem>>, vector<32x384xf32>
    %c0_2 = arith.constant 0 : index
    %c0_3 = arith.constant 0 : index
    %4 = vector.load %arg3[%c0_2, %c0_3] : memref<32x384xf32, #tpu.memory_space<vmem>>, vector<32x384xf32>
    %c0_4 = arith.constant 0 : index
    %c0_5 = arith.constant 0 : index
    %c0_6 = arith.constant 0 : index
    %5 = vector.load %arg4[%c0_4, %c0_5, %c0_6] : memref<1x1x384xf32, #tpu.memory_space<vmem>>, vector<1x1x384xf32>
    %6 = arith.subf %3, %4 : vector<32x384xf32>
    %7 = math.absf %6 : vector<32x384xf32>
    %cst = arith.constant dense<0.000000e+00> : vector<384xf32>
    %8 = vector.multi_reduction <add>, %7, %cst [0] : vector<32x384xf32> to vector<384xf32>
    %9 = vector.shape_cast %8 : vector<384xf32> to vector<1x384xf32>
    %10 = vector.shape_cast %9 : vector<1x384xf32> to vector<1x1x384xf32>
    %11 = arith.addf %5, %10 : vector<1x1x384xf32>
    %c0_7 = arith.constant 0 : index
    %c0_8 = arith.constant 0 : index
    %c0_9 = arith.constant 0 : index
    %12 = vector.load %arg4[%c0_7, %c0_8, %c0_9] : memref<1x1x384xf32, #tpu.memory_space<vmem>>, vector<1x1x384xf32>
    tpu.vector_store %arg4[%c0_7, %c0_8, %c0_9], %11 {strides = array<i32>} : memref<1x1x384xf32, #tpu.memory_space<vmem>>, vector<1x1x384xf32>,
    %13 = tpu.iota {dimensions = array<i32: 1>} : vector<1x384xi32>
    %c12_i32 = arith.constant 12 : i32
    %c0_i32_10 = arith.constant 0 : i32
    %14 = arith.cmpi eq, %c12_i32, %c0_i32_10 : i32
    %c1_i32 = arith.constant 1 : i32
    %15 = arith.select %14, %c1_i32, %c12_i32 : i32
    %16 = vector.broadcast %15 : i32 to vector<1x384xi32>
    %17 = arith.remsi %13, %16 : vector<1x384xi32>
    %c0_i32_11 = arith.constant 0 : i32
    %18 = vector.broadcast %c0_i32_11 : i32 to vector<1x384xi32>
    %19 = arith.cmpi ne, %17, %18 : vector<1x384xi32>
    %c0_i32_12 = arith.constant 0 : i32
    %20 = vector.broadcast %c0_i32_12 : i32 to vector<1x384xi32>
    %21 = arith.cmpi slt, %17, %20 : vector<1x384xi32>
    %c0_i32_13 = arith.constant 0 : i32
    %22 = arith.cmpi slt, %15, %c0_i32_13 : i32
    %23 = vector.broadcast %22 : i1 to vector<1x384xi1>
    %24 = vector.broadcast %23 : vector<1x384xi1> to vector<1x384xi1>
    %25 = arith.xori %21, %24 : vector<1x384xi1>
    %26 = arith.andi %25, %19 : vector<1x384xi1>
    %27 = vector.broadcast %15 : i32 to vector<1x384xi32>
    %28 = arith.addi %17, %27 : vector<1x384xi32>
    %29 = arith.select %26, %28, %17 : vector<1x384xi1>, vector<1x384xi32>
    %c4_i32 = arith.constant 4 : i32
    %30 = vector.broadcast %c4_i32 : i32 to vector<1x384xi32>
    %31 = arith.cmpi sge, %29, %30 : vector<1x384xi32>
    %c6_i32 = arith.constant 6 : i32
    %32 = vector.broadcast %c6_i32 : i32 to vector<1x384xi32>
    %33 = arith.cmpi sle, %29, %32 : vector<1x384xi32>
    %34 = arith.andi %31, %33 : vector<1x384xi1>
    %cst_14 = arith.constant -3.000000e+38 : f32
    %35 = vector.shape_cast %34 : vector<1x384xi1> to vector<1x384xi1>
    %36 = vector.broadcast %35 : vector<1x384xi1> to vector<32x384xi1>
    %37 = vector.broadcast %cst_14 : f32 to vector<32x384xf32>
    %38 = arith.select %36, %4, %37 : vector<32x384xi1>, vector<32x384xf32>
    %c1_i32_15 = arith.constant 1 : i32
    %39 = tpu.dynamic_rotate %38 by %c1_i32_15 dim 1 : vector<32x384xf32>, i32 -> vector<32x384xf32>
    %40 = arith.maximumf %38, %39 : vector<32x384xf32>
    %c383_i32 = arith.constant 383 : i32
    %41 = tpu.dynamic_rotate %38 by %c383_i32 dim 1 : vector<32x384xf32>, i32 -> vector<32x384xf32>
    %42 = arith.maximumf %40, %41 : vector<32x384xf32>
    %c2_i32 = arith.constant 2 : i32
    %43 = tpu.dynamic_rotate %38 by %c2_i32 dim 1 : vector<32x384xf32>, i32 -> vector<32x384xf32>
    %44 = arith.maximumf %42, %43 : vector<32x384xf32>
    %c382_i32 = arith.constant 382 : i32
    %45 = tpu.dynamic_rotate %38 by %c382_i32 dim 1 : vector<32x384xf32>, i32 -> vector<32x384xf32>
    %46 = arith.maximumf %44, %45 : vector<32x384xf32>
    %47 = arith.cmpf oge, %4, %46 : vector<32x384xf32>
    %48 = vector.broadcast %34 : vector<1x384xi1> to vector<32x384xi1>
    %49 = arith.andi %48, %47 : vector<32x384xi1>
    %cst_16 = arith.constant 1.000000e+00 : f32
    %cst_17 = arith.constant 0.000000e+00 : f32
    %50 = vector.broadcast %cst_16 : f32 to vector<32x384xf32>
    %51 = vector.broadcast %cst_17 : f32 to vector<32x384xf32>
    %52 = arith.select %49, %50, %51 : vector<32x384xi1>, vector<32x384xf32>
    %c7_i32 = arith.constant 7 : i32
    %53 = vector.broadcast %c7_i32 : i32 to vector<1x384xi32>
    %54 = arith.cmpi sge, %29, %53 : vector<1x384xi32>
    %c11_i32 = arith.constant 11 : i32
    %55 = vector.broadcast %c11_i32 : i32 to vector<1x384xi32>
    %56 = arith.cmpi sle, %29, %55 : vector<1x384xi32>
    %57 = arith.andi %54, %56 : vector<1x384xi1>
    %cst_18 = arith.constant -3.000000e+38 : f32
    %58 = vector.shape_cast %57 : vector<1x384xi1> to vector<1x384xi1>
    %59 = vector.broadcast %58 : vector<1x384xi1> to vector<32x384xi1>
    %60 = vector.broadcast %cst_18 : f32 to vector<32x384xf32>
    %61 = arith.select %59, %4, %60 : vector<32x384xi1>, vector<32x384xf32>
    %c1_i32_19 = arith.constant 1 : i32
    %62 = tpu.dynamic_rotate %61 by %c1_i32_19 dim 1 : vector<32x384xf32>, i32 -> vector<32x384xf32>
    %63 = arith.maximumf %61, %62 : vector<32x384xf32>
    %c383_i32_20 = arith.constant 383 : i32
    %64 = tpu.dynamic_rotate %61 by %c383_i32_20 dim 1 : vector<32x384xf32>, i32 -> vector<32x384xf32>
    %65 = arith.maximumf %63, %64 : vector<32x384xf32>
    %c2_i32_21 = arith.constant 2 : i32
    %66 = tpu.dynamic_rotate %61 by %c2_i32_21 dim 1 : vector<32x384xf32>, i32 -> vector<32x384xf32>
    %67 = arith.maximumf %65, %66 : vector<32x384xf32>
    %c382_i32_22 = arith.constant 382 : i32
    %68 = tpu.dynamic_rotate %61 by %c382_i32_22 dim 1 : vector<32x384xf32>, i32 -> vector<32x384xf32>
    %69 = arith.maximumf %67, %68 : vector<32x384xf32>
    %c3_i32 = arith.constant 3 : i32
    %70 = tpu.dynamic_rotate %61 by %c3_i32 dim 1 : vector<32x384xf32>, i32 -> vector<32x384xf32>
    %71 = arith.maximumf %69, %70 : vector<32x384xf32>
    %c381_i32 = arith.constant 381 : i32
    %72 = tpu.dynamic_rotate %61 by %c381_i32 dim 1 : vector<32x384xf32>, i32 -> vector<32x384xf32>
    %73 = arith.maximumf %71, %72 : vector<32x384xf32>
    %c4_i32_23 = arith.constant 4 : i32
    %74 = tpu.dynamic_rotate %61 by %c4_i32_23 dim 1 : vector<32x384xf32>, i32 -> vector<32x384xf32>
    %75 = arith.maximumf %73, %74 : vector<32x384xf32>
    %c380_i32 = arith.constant 380 : i32
    %76 = tpu.dynamic_rotate %61 by %c380_i32 dim 1 : vector<32x384xf32>, i32 -> vector<32x384xf32>
    %77 = arith.maximumf %75, %76 : vector<32x384xf32>
    %78 = arith.cmpf oge, %4, %77 : vector<32x384xf32>
    %79 = vector.broadcast %57 : vector<1x384xi1> to vector<32x384xi1>
    %80 = arith.andi %79, %78 : vector<32x384xi1>
    %cst_24 = arith.constant 1.000000e+00 : f32
    %cst_25 = arith.constant 0.000000e+00 : f32
    %81 = vector.broadcast %cst_24 : f32 to vector<32x384xf32>
    %82 = vector.broadcast %cst_25 : f32 to vector<32x384xf32>
    %83 = arith.select %80, %81, %82 : vector<32x384xi1>, vector<32x384xf32>
    %84 = arith.addf %52, %83 : vector<32x384xf32>
    %c0_26 = arith.constant 0 : index
    %c0_27 = arith.constant 0 : index
    %c0_28 = arith.constant 0 : index
    %85 = vector.load %arg5[%c0_26, %c0_27, %c0_28] : memref<1x1x384xf32, #tpu.memory_space<vmem>>, vector<1x1x384xf32>
    %86 = arith.mulf %3, %84 : vector<32x384xf32>
    %cst_29 = arith.constant dense<0.000000e+00> : vector<384xf32>
    %87 = vector.multi_reduction <add>, %86, %cst_29 [0] : vector<32x384xf32> to vector<384xf32>
    %88 = vector.shape_cast %87 : vector<384xf32> to vector<1x384xf32>
    %89 = vector.shape_cast %88 : vector<1x384xf32> to vector<1x1x384xf32>
    %90 = arith.addf %85, %89 : vector<1x1x384xf32>
    %c0_30 = arith.constant 0 : index
    %c0_31 = arith.constant 0 : index
    %c0_32 = arith.constant 0 : index
    %91 = vector.load %arg5[%c0_30, %c0_31, %c0_32] : memref<1x1x384xf32, #tpu.memory_space<vmem>>, vector<1x1x384xf32>
    tpu.vector_store %arg5[%c0_30, %c0_31, %c0_32], %90 {strides = array<i32>} : memref<1x1x384xf32, #tpu.memory_space<vmem>>, vector<1x1x384xf32>,
    return
  }
  func.func @transform_0(%arg0: i32, %arg1: i32) -> (i32, i32) {
    %c1_i32 = arith.constant 1 : i32
    %0 = arith.muli %arg0, %c1_i32 : i32
    %1 = arith.addi %0, %arg1 : i32
    %c0_i32 = arith.constant 0 : i32
    %c0_i32_0 = arith.constant 0 : i32
    return %1, %c0_i32 : i32, i32
  }
  func.func @transform_1(%arg0: i32, %arg1: i32) -> (i32, i32) {
    %c1_i32 = arith.constant 1 : i32
    %0 = arith.muli %arg0, %c1_i32 : i32
    %1 = arith.addi %0, %arg1 : i32
    %c0_i32 = arith.constant 0 : i32
    %c0_i32_0 = arith.constant 0 : i32
    return %1, %c0_i32 : i32, i32
  }
  func.func @transform_2(%arg0: i32, %arg1: i32) -> (i32, i32, i32) {
    %c0_i32 = arith.constant 0 : i32
    %c0_i32_0 = arith.constant 0 : i32
    %c0_i32_1 = arith.constant 0 : i32
    return %arg0, %c0_i32, %c0_i32_0 : i32, i32, i32
  }
  func.func @transform_3(%arg0: i32, %arg1: i32) -> (i32, i32, i32) {
    %c0_i32 = arith.constant 0 : i32
    %c0_i32_0 = arith.constant 0 : i32
    %c0_i32_1 = arith.constant 0 : i32
    return %arg0, %c0_i32, %c0_i32_0 : i32, i32, i32
  }
}

</mosaic_0001>

<bundles_post_ra>
// kernel: _forward.1
= control target key start
LH: loop header
LB: loop body
LE: loop exit
PB: predicated region body
PF: predicated region fallthrough
CT: control target
= control target key end

     0   :  { %v2874_v0 = vlaneseq  ;;  %v2974_v24 = vmov 0  ;;  %s1073_s20 = smov 1   ;;  %v2981_v34 = vmov 0  ;;  %v2988_v44 = vmov 0  ;;  %s1074_s10 = smov 127   ;;  %s2870_s1 = inlined_call_operand.vmem [shape: f32[32,384], index: 1, kind: input, shape index: {}]   ;;  %s2871_s0 = inlined_call_operand.vmem [shape: f32[32,384], index: 0, kind: input, shape index: {}]   ;;  %s2872_s2 = inlined_call_operand.vmem [shape: f32[1,1,384], index: 2, kind: output, shape index: {0}]   ;;  %s2873_s3 = inlined_call_operand.vmem [shape: f32[1,1,384], index: 3, kind: output, shape index: {1}]  }
   0x1   :  { %v1125_v20 = vld [vmem:[%s2870_s1 + $0x30] sm:$0xff]  ;;  %v1132_v22 = vld [vmem:[%s2870_s1] sm:$0xff]  ;;  %v1143_v25 = vld [vmem:[%s2870_s1 + $0x48] sm:$0xff]  ;;  %s1075_s11 = smov 2   ;;  %s1076_s12 = smov 126   ;;  %v2995_v52 = vmov 0 }
   0x2   :  { %v1104_v1 = vand.u32 127, %v2874_v0  ;;  %v1148_v26 = vld [vmem:[%s2870_s1 + $0x18] sm:$0xff]  ;;  %v1181_v33 = vld [vmem:[%s2870_s1 + $0x20] sm:$0xff]  ;;  %v1190_v35 = vld [vmem:[%s2870_s1 + $0x8] sm:$0xff]  ;;  %v2998_v57 = vmov 0  ;;  %v3001_v62 = vmov 0 }
   0x3   :  { %v1211_v39 = vld [vmem:[%s2870_s1 + $0x50] sm:$0xff]  ;;  %v1216_v40 = vld [vmem:[%s2870_s1 + $0x38] sm:$0xff]  ;;  %v1237_v43 = vld [vmem:[%s2870_s1 + $0x28] sm:$0xff]  ;;  %s1077_s13 = smov 3   ;;  %s1078_s14 = smov 125  }
   0x4   :  { %v1107_v2 = vmul.u32.u64.low 2863311531, %v1104_v1  ;;  %v1108_v3 = vmul.u32.u64.high 2863311531, %v1104_v1, %v1107_v2  ;;  %v184_v4 = vadd.s32 128, %v1104_v1  ;;  %v185_v5 = vadd.s32 256, %v1104_v1  ;;  %v1246_v45 = vld [vmem:[%s2870_s1 + $0x10] sm:$0xff]  ;;  %v1265_v48 = vld [vmem:[%s2870_s1 + $0x58] sm:$0xff] }
   0x5   :  { %v1270_v49 = vld [vmem:[%s2870_s1 + $0x40] sm:$0xff]  ;;  %s1079_s15 = smov 4   ;;  %s1080_s16 = smov 124  }
   0x6   :  { %v1112_v6 = vmul.u32.u64.low 2863311531, %v184_v4  ;;  %v1113_v7 = vmul.u32.u64.high 2863311531, %v184_v4, %v1112_v6  ;;  %v1115_v8 = vmul.u32.u64.low 2863311531, %v185_v5  ;;  %v1116_v9 = vmul.u32.u64.high 2863311531, %v185_v5, %v1115_v8 }
   0x7   :  { %v192_v10 = vshrl.u32 %v1108_v3, 3 }
   0x8   :  { %v203_v12 = vshrl.u32 %v1113_v7, 3  ;;  %v214_v13 = vshrl.u32 %v1116_v9, 3 }
   0x9   :  { %v193_v11 = vmul.u32 12, %v192_v10 }
   0xa   :  { %v204_v15 = vmul.u32 12, %v203_v12  ;;  %v215_v16 = vmul.u32 12, %v214_v13 }
   0xb   :  { %v194_v14 = vsub.s32 %v1104_v1, %v193_v11 }
   0xc   :  { %v205_v18 = vsub.s32 %v184_v4, %v204_v15  ;;  %v216_v19 = vsub.s32 %v185_v5, %v215_v16 }
   0xd   :  { %vm219_vm0 = vcmp.ne.s32.totalorder %v194_v14, 0  ;;  %vm222_vm1 = vcmp.lt.s32.totalorder %v194_v14, 0  ;;  %v228_v17 = vadd.s32 12, %v194_v14 }
   0xe   :  { %vm225_vm2 = vmand %vm222_vm1, %vm219_vm0  ;;  %vm220_vm3 = vcmp.ne.s32.totalorder %v205_v18, 0  ;;  %vm223_vm4 = vcmp.lt.s32.totalorder %v205_v18, 0  ;;  %v229_v23 = vadd.s32 12, %v205_v18  ;;  %vm221_vm9 = vcmp.ne.s32.totalorder %v216_v19, 0 }
   0xf   :  { %v1127_v21 = vsel %vm225_vm2, %v228_v17, %v194_v14  ;;  %vm226_vm7 = vmand %vm223_vm4, %vm220_vm3  ;;  %vm224_vm10 = vcmp.lt.s32.totalorder %v216_v19, 0  ;;  %v230_v30 = vadd.s32 12, %v216_v19 }
  0x10   :  { %vm234_vm5 = vcmp.ge.s32.totalorder %v1127_v21, 4  ;;  %vm237_vm6 = vcmp.le.s32.totalorder %v1127_v21, 6  ;;  %v1150_v27 = vsel %vm226_vm7, %v229_v23, %v205_v18  ;;  %vm227_vm13 = vmand %vm224_vm10, %vm221_vm9  ;;  %vm493_vm2 = vcmp.ge.s32.totalorder %v1127_v21, 7 }
  0x11   :  { %vm1136_vm8 = vmand %vm234_vm5, %vm237_vm6  ;;  %vm235_vm11 = vcmp.ge.s32.totalorder %v1150_v27, 4  ;;  %vm238_vm12 = vcmp.le.s32.totalorder %v1150_v27, 6  ;;  %v1196_v36 = vsel %vm227_vm13, %v230_v30, %v216_v19  ;;  %vm496_vm3 = vcmp.le.s32.totalorder %v1127_v21, 11 }
  0x12   :  { %v2975_v24 = vsel %vm1136_vm8, 4294967295, %v2974_v24  ;;  %v1155_v28 = vsel %vm1136_vm8, %v1125_v20, -3e+38  ;;  %v1160_v29 = vsel %vm1136_vm8, %v1132_v22, -3e+38  ;;  %vm1183_vm14 = vmand %vm235_vm11, %vm238_vm12  ;;  %vm236_vm15 = vcmp.ge.s32.totalorder %v1196_v36, 4 }
  0x13   :  { %2976 = vst [vmem:[#allocation2_spill] sm:$0xff] %v2975_v24  ;;  %2977 = vst [vmem:[#allocation3_spill] sm:$0xff] %v1155_v28  ;;  %265 = vrot.lane.b32.xlu1 %v1155_v28, %s1073_s20  ;;  %261 = vrot.lane.b32.xlu0 %v1160_v29, %s1073_s20  ;;  %v1169_v31 = vsel %vm1136_vm8, %v1143_v25, -3e+38  ;;  %v1174_v32 = vsel %vm1136_vm8, %v1148_v26, -3e+38 }
  0x14   :  { %2978 = vst [vmem:[#allocation4_spill] sm:$0xff] %v1160_v29  ;;  %2979 = vst [vmem:[#allocation5_spill] sm:$0xff] %v1169_v31  ;;  %v2982_v34 = vsel %vm1183_vm14, 4294967295, %v2981_v34  ;;  %v1201_v37 = vsel %vm1183_vm14, %v1181_v33, -3e+38  ;;  %vm239_vm0 = vcmp.le.s32.totalorder %v1196_v36, 6 }
  0x15   :  { %2980 = vst [vmem:[#allocation6_spill] sm:$0xff] %v1174_v32  ;;  %2983 = vst [vmem:[#allocation7_spill] sm:$0xff] %v2982_v34  ;;  %v1206_v38 = vsel %vm1183_vm14, %v1190_v35, -3e+38  ;;  %v1227_v41 = vsel %vm1183_vm14, %v1211_v39, -3e+38 }
  0x16   :  { %2984 = vst [vmem:[#allocation8_spill] sm:$0xff] %v1201_v37  ;;  %2985 = vst [vmem:[#allocation9_spill] sm:$0xff] %v1206_v38  ;;  %v1232_v42 = vsel %vm1183_vm14, %v1216_v40, -3e+38  ;;  %vm494_vm5 = vcmp.ge.s32.totalorder %v1150_v27, 7  ;;  %vm497_vm6 = vcmp.le.s32.totalorder %v1150_v27, 11 }
  0x17   :  { %267 = vrot.lane.b32.xlu1 %v1169_v31, %s1073_s20  ;;  %263 = vrot.lane.b32.xlu0 %v1174_v32, %s1073_s20  ;;  %2986 = vst [vmem:[#allocation10_spill] sm:$0xff] %v1227_v41  ;;  %2987 = vst [vmem:[#allocation11_spill] sm:$0xff] %v1232_v42  ;;  %vm495_vm9 = vcmp.ge.s32.totalorder %v1196_v36, 7  ;;  %vm498_vm10 = vcmp.le.s32.totalorder %v1196_v36, 11  ;;  %vm285_vm12 = vcmp.lt.s32.totalorder %v1104_v1, 1  ;;  %vm334_vm13 = vcmp.lt.s32.totalorder %v1104_v1, 127 }
  0x18   :  { %vm1239_vm1 = vmand %vm236_vm15, %vm239_vm0  ;;  %vm383_vm15 = vcmp.lt.s32.totalorder %v1104_v1, 2  ;;  %vm432_vm0 = vcmp.lt.s32.totalorder %v1104_v1, 126 }
  0x19   :  { %v2989_v44 = vsel %vm1239_vm1, 4294967295, %v2988_v44  ;;  %v1255_v46 = vsel %vm1239_vm1, %v1237_v43, -3e+38  ;;  %v1260_v47 = vsel %vm1239_vm1, %v1246_v45, -3e+38  ;;  %vm1360_vm4 = vmand %vm493_vm2, %vm496_vm3  ;;  %vm2971_vm3 = vcmp.lt.s32.totalorder %v1104_v1, 3 }
  0x1a   :  { %2990 = vst [vmem:[#allocation12_spill] sm:$0xff] %v2989_v44  ;;  %2991 = vst [vmem:[#allocation13_spill] sm:$0xff] %v1255_v46  ;;  %v1279_v50 = vsel %vm1239_vm1, %v1265_v48, -3e+38  ;;  %v1284_v51 = vsel %vm1239_vm1, %v1270_v49, -3e+38 }
  0x1b   :  { %271 = vrot.lane.b32.xlu1 %v1201_v37, %s1073_s20  ;;  %269 = vrot.lane.b32.xlu0 %v1206_v38, %s1073_s20  ;;  %2992 = vst [vmem:[#allocation14_spill] sm:$0xff] %v1260_v47  ;;  %2993 = vst [vmem:[#allocation15_spill] sm:$0xff] %v1279_v50  ;;  %v2996_v52 = vsel %vm1360_vm4, 4294967295, %v2995_v52  ;;  %v1371_v53 = vsel %vm1360_vm4, %v1132_v22, -3e+38 }
  0x1c   :  { %2994 = vst [vmem:[#allocation16_spill] sm:$0xff] %v1284_v51  ;;  %2997 = vst [vmem:[#allocation17_spill] sm:$0xff] %v2996_v52  ;;  %v1376_v54 = vsel %vm1360_vm4, %v1148_v26, -3e+38  ;;  %v1387_v55 = vsel %vm1360_vm4, %v1125_v20, -3e+38 }
  0x1d   :  { %v1392_v56 = vsel %vm1360_vm4, %v1143_v25, -3e+38  ;;  %vm1394_vm7 = vmand %vm494_vm5, %vm497_vm6  ;;  %vm2972_vm5 = vcmp.lt.s32.totalorder %v1104_v1, 125 }
  0x1e   :  { %v2999_v57 = vsel %vm1394_vm7, 4294967295, %v2998_v57  ;;  %v1405_v58 = vsel %vm1394_vm7, %v1181_v33, -3e+38  ;;  %v1410_v59 = vsel %vm1394_vm7, %v1190_v35, -3e+38  ;;  %vm1428_vm11 = vmand %vm495_vm9, %vm498_vm10 }
  0x1f   :  { %275 = vrot.lane.b32.xlu1 %v1227_v41, %s1073_s20  ;;  %273 = vrot.lane.b32.xlu0 %v1232_v42, %s1073_s20  ;;  %3000 = vst [vmem:[#allocation18_spill] sm:$0xff] %v2999_v57  ;;  %v1421_v60 = vsel %vm1394_vm7, %v1211_v39, -3e+38  ;;  %v1426_v61 = vsel %vm1394_vm7, %v1216_v40, -3e+38  ;;  %v3002_v62 = vsel %vm1428_vm11, 4294967295, %v3001_v62 }
  0x20   :  { %3003 = vst [vmem:[#allocation19_spill] sm:$0xff] %v3002_v62  ;;  %v1439_v63 = vsel %vm1428_vm11, %v1237_v43, -3e+38  ;;  %v1444_v2 = vsel %vm1428_vm11, %v1246_v45, -3e+38 }
  0x21   :  { %v1453_v3 = vsel %vm1428_vm11, %v1265_v48, -3e+38  ;;  %v1458_v4 = vsel %vm1428_vm11, %v1270_v49, -3e+38 }
  0x23   :  { %279 = vrot.lane.b32.xlu1 %v1255_v46, %s1073_s20  ;;  %277 = vrot.lane.b32.xlu0 %v1260_v47, %s1073_s20 }
  0x27   :  { %283 = vrot.lane.b32.xlu1 %v1279_v50, %s1073_s20  ;;  %281 = vrot.lane.b32.xlu0 %v1284_v51, %s1073_s20 }
  0x2b   :  { %312 = vrot.lane.b32.xlu1 %v1174_v32, %s1074_s10  ;;  %310 = vrot.lane.b32.xlu0 %v1160_v29, %s1074_s10 }
  0x2f   :  { %316 = vrot.lane.b32.xlu1 %v1169_v31, %s1074_s10  ;;  %314 = vrot.lane.b32.xlu0 %v1155_v28, %s1074_s10 }
  0x33   :  { %320 = vrot.lane.b32.xlu1 %v1201_v37, %s1074_s10  ;;  %318 = vrot.lane.b32.xlu0 %v1206_v38, %s1074_s10 }
  0x37   :  { %324 = vrot.lane.b32.xlu1 %v1227_v41, %s1074_s10  ;;  %322 = vrot.lane.b32.xlu0 %v1232_v42, %s1074_s10 }
  0x3b   :  { %328 = vrot.lane.b32.xlu1 %v1255_v46, %s1074_s10  ;;  %326 = vrot.lane.b32.xlu0 %v1260_v47, %s1074_s10 }
  0x3f   :  { %332 = vrot.lane.b32.xlu1 %v1279_v50, %s1074_s10  ;;  %330 = vrot.lane.b32.xlu0 %v1284_v51, %s1074_s10 }
  0x43   :  { %361 = vrot.lane.b32.xlu1 %v1174_v32, %s1075_s11  ;;  %359 = vrot.lane.b32.xlu0 %v1160_v29, %s1075_s11 }
  0x47   :  { %365 = vrot.lane.b32.xlu1 %v1169_v31, %s1075_s11  ;;  %363 = vrot.lane.b32.xlu0 %v1155_v28, %s1075_s11 }
  0x4b   :  { %369 = vrot.lane.b32.xlu1 %v1201_v37, %s1075_s11  ;;  %367 = vrot.lane.b32.xlu0 %v1206_v38, %s1075_s11 }
  0x4f   :  { %373 = vrot.lane.b32.xlu1 %v1227_v41, %s1075_s11  ;;  %371 = vrot.lane.b32.xlu0 %v1232_v42, %s1075_s11 }
  0x53   :  { %377 = vrot.lane.b32.xlu1 %v1255_v46, %s1075_s11  ;;  %375 = vrot.lane.b32.xlu0 %v1260_v47, %s1075_s11 }
  0x57   :  { %381 = vrot.lane.b32.xlu1 %v1279_v50, %s1075_s11  ;;  %379 = vrot.lane.b32.xlu0 %v1284_v51, %s1075_s11 }
  0x5b   :  { %410 = vrot.lane.b32.xlu1 %v1174_v32, %s1076_s12  ;;  %408 = vrot.lane.b32.xlu0 %v1160_v29, %s1076_s12 }
  0x5f   :  { %414 = vrot.lane.b32.xlu1 %v1169_v31, %s1076_s12  ;;  %412 = vrot.lane.b32.xlu0 %v1155_v28, %s1076_s12 }
  0x63   :  { %418 = vrot.lane.b32.xlu1 %v1201_v37, %s1076_s12  ;;  %416 = vrot.lane.b32.xlu0 %v1206_v38, %s1076_s12 }
  0x67   :  { %422 = vrot.lane.b32.xlu1 %v1227_v41, %s1076_s12  ;;  %420 = vrot.lane.b32.xlu0 %v1232_v42, %s1076_s12 }
  0x6b   :  { %426 = vrot.lane.b32.xlu1 %v1255_v46, %s1076_s12  ;;  %424 = vrot.lane.b32.xlu0 %v1260_v47, %s1076_s12 }
  0x6f   :  { %430 = vrot.lane.b32.xlu1 %v1279_v50, %s1076_s12  ;;  %428 = vrot.lane.b32.xlu0 %v1284_v51, %s1076_s12 }
  0x73   :  { %522 = vrot.lane.b32.xlu1 %v1376_v54, %s1073_s20  ;;  %520 = vrot.lane.b32.xlu0 %v1371_v53, %s1073_s20 }
  0x77   :  { %526 = vrot.lane.b32.xlu1 %v1392_v56, %s1073_s20  ;;  %524 = vrot.lane.b32.xlu0 %v1387_v55, %s1073_s20 }
  0x7b   :  { %530 = vrot.lane.b32.xlu1 %v1405_v58, %s1073_s20  ;;  %528 = vrot.lane.b32.xlu0 %v1410_v59, %s1073_s20 }
  0x7f   :  { %534 = vrot.lane.b32.xlu1 %v1421_v60, %s1073_s20  ;;  %532 = vrot.lane.b32.xlu0 %v1426_v61, %s1073_s20 }
  0x83   :  { %538 = vrot.lane.b32.xlu1 %v1439_v63, %s1073_s20  ;;  %536 = vrot.lane.b32.xlu0 %v1444_v2, %s1073_s20 }
  0x85   :  { %v1460_v5 = vpop.permute.xlu1 %265  ;;  %v1462_v6 = vpop.permute.xlu0 %261 }
  0x87   :  { %542 = vrot.lane.b32.xlu1 %v1453_v3, %s1073_s20  ;;  %540 = vrot.lane.b32.xlu0 %v1458_v4, %s1073_s20 }
  0x89   :  { %v1468_v7 = vpop.permute.xlu1 %267  ;;  %v1470_v8 = vpop.permute.xlu0 %263 }
  0x8b   :  { %570 = vrot.lane.b32.xlu1 %v1376_v54, %s1074_s10  ;;  %568 = vrot.lane.b32.xlu0 %v1371_v53, %s1074_s10 }
  0x8d   :  { %v1476_v9 = vpop.permute.xlu1 %271  ;;  %v1478_v10 = vpop.permute.xlu0 %269 }
  0x8f   :  { %574 = vrot.lane.b32.xlu1 %v1392_v56, %s1074_s10  ;;  %572 = vrot.lane.b32.xlu0 %v1387_v55, %s1074_s10 }
  0x91   :  { %v1484_v11 = vpop.permute.xlu1 %275  ;;  %v1486_v12 = vpop.permute.xlu0 %273 }
  0x93   :  { %578 = vrot.lane.b32.xlu1 %v1405_v58, %s1074_s10  ;;  %576 = vrot.lane.b32.xlu0 %v1410_v59, %s1074_s10 }
  0x95   :  { %v1492_v13 = vpop.permute.xlu1 %279  ;;  %v1494_v14 = vpop.permute.xlu0 %277 }
  0x96   :  { %3004 = vst [vmem:[#allocation20_spill] sm:$0xff] %v1494_v14 }
  0x97   :  { %582 = vrot.lane.b32.xlu1 %v1421_v60, %s1074_s10  ;;  %580 = vrot.lane.b32.xlu0 %v1426_v61, %s1074_s10 }
  0x99   :  { %v1500_v15 = vpop.permute.xlu1 %283  ;;  %v1502_v16 = vpop.permute.xlu0 %281 }
  0x9a   :  { %3005 = vst [vmem:[#allocation21_spill] sm:$0xff] %v1500_v15  ;;  %3006 = vst [vmem:[#allocation22_spill] sm:$0xff] %v1502_v16 }
  0x9b   :  { %586 = vrot.lane.b32.xlu1 %v1439_v63, %s1074_s10  ;;  %584 = vrot.lane.b32.xlu0 %v1444_v2, %s1074_s10 }
  0x9d   :  { %v1508_v17 = vpop.permute.xlu1 %312  ;;  %v1510_v18 = vpop.permute.xlu0 %310 }
  0x9e   :  { %3007 = vst [vmem:[#allocation23_spill] sm:$0xff] %v1508_v17  ;;  %3008 = vst [vmem:[#allocation24_spill] sm:$0xff] %v1510_v18 }
  0x9f   :  { %590 = vrot.lane.b32.xlu1 %v1453_v3, %s1074_s10  ;;  %588 = vrot.lane.b32.xlu0 %v1458_v4, %s1074_s10 }
  0xa1   :  { %v1516_v19 = vpop.permute.xlu1 %316  ;;  %v1518_v21 = vpop.permute.xlu0 %314 }
  0xa2   :  { %3009 = vst [vmem:[#allocation25_spill] sm:$0xff] %v1516_v19  ;;  %3010 = vst [vmem:[#allocation26_spill] sm:$0xff] %v1518_v21 }
  0xa3   :  { %618 = vrot.lane.b32.xlu1 %v1376_v54, %s1075_s11  ;;  %616 = vrot.lane.b32.xlu0 %v1371_v53, %s1075_s11 }
  0xa5   :  { %v1524_v23 = vpop.permute.xlu1 %320  ;;  %v1526_v27 = vpop.permute.xlu0 %318 }
  0xa6   :  { %3011 = vst [vmem:[#allocation27_spill] sm:$0xff] %v1524_v23  ;;  %3012 = vst [vmem:[#allocation28_spill] sm:$0xff] %v1526_v27 }
  0xa7   :  { %622 = vrot.lane.b32.xlu1 %v1392_v56, %s1075_s11  ;;  %620 = vrot.lane.b32.xlu0 %v1387_v55, %s1075_s11 }
  0xa9   :  { %v1532_v30 = vpop.permute.xlu1 %324  ;;  %v1534_v36 = vpop.permute.xlu0 %322 }
  0xaa   :  { %3013 = vst [vmem:[#allocation29_spill] sm:$0xff] %v1532_v30  ;;  %3014 = vst [vmem:[#allocation30_spill] sm:$0xff] %v1534_v36 }
  0xab   :  { %626 = vrot.lane.b32.xlu1 %v1405_v58, %s1075_s11  ;;  %624 = vrot.lane.b32.xlu0 %v1410_v59, %s1075_s11 }
  0xad   :  { %v1540_v0 = vpop.permute.xlu1 %328  ;;  %v1542_v62 = vpop.permute.xlu0 %326 }
  0xae   :  { %3015 = vst [vmem:[#allocation31_spill] sm:$0xff] %v1540_v0  ;;  %3016 = vst [vmem:[#allocation32_spill] sm:$0xff] %v1542_v62 }
  0xaf   :  { %630 = vrot.lane.b32.xlu1 %v1421_v60, %s1075_s11  ;;  %628 = vrot.lane.b32.xlu0 %v1426_v61, %s1075_s11 }
  0xb1   :  { %v1548_v57 = vpop.permute.xlu1 %332  ;;  %v1550_v52 = vpop.permute.xlu0 %330 }
  0xb2   :  { %3017 = vst [vmem:[#allocation33_spill] sm:$0xff] %v1548_v57  ;;  %3018 = vst [vmem:[#allocation34_spill] sm:$0xff] %v1550_v52 }
  0xb3   :  { %634 = vrot.lane.b32.xlu1 %v1439_v63, %s1075_s11  ;;  %632 = vrot.lane.b32.xlu0 %v1444_v2, %s1075_s11 }
  0xb5   :  { %v1556_v44 = vpop.permute.xlu1 %361  ;;  %v1558_v34 = vpop.permute.xlu0 %359 }
  0xb6   :  { %3019 = vst [vmem:[#allocation35_spill] sm:$0xff] %v1556_v44  ;;  %3020 = vst [vmem:[#allocation36_spill] sm:$0xff] %v1558_v34 }
  0xb7   :  { %638 = vrot.lane.b32.xlu1 %v1453_v3, %s1075_s11  ;;  %636 = vrot.lane.b32.xlu0 %v1458_v4, %s1075_s11 }
  0xb9   :  { %v1564_v24 = vpop.permute.xlu1 %365  ;;  %v1566_v57 = vpop.permute.xlu0 %363 }
  0xba   :  { %3021 = vst [vmem:[#allocation37_spill] sm:$0xff] %v1564_v24  ;;  %3022 = vst [vmem:[#allocation38_spill] sm:$0xff] %v1566_v57 }
  0xbb   :  { %666 = vrot.lane.b32.xlu1 %v1376_v54, %s1076_s12  ;;  %664 = vrot.lane.b32.xlu0 %v1371_v53, %s1076_s12 }
  0xbd   :  { %v1572_v52 = vpop.permute.xlu1 %369  ;;  %v1574_v44 = vpop.permute.xlu0 %367 }
  0xbe   :  { %3023 = vst [vmem:[#allocation39_spill] sm:$0xff] %v1572_v52  ;;  %3024 = vst [vmem:[#allocation40_spill] sm:$0xff] %v1574_v44 }
  0xbf   :  { %670 = vrot.lane.b32.xlu1 %v1392_v56, %s1076_s12  ;;  %668 = vrot.lane.b32.xlu0 %v1387_v55, %s1076_s12 }
  0xc1   :  { %v1580_v34 = vpop.permute.xlu1 %373  ;;  %v1582_v24 = vpop.permute.xlu0 %371 }
  0xc2   :  { %3025 = vst [vmem:[#allocation41_spill] sm:$0xff] %v1580_v34  ;;  %3026 = vst [vmem:[#allocation42_spill] sm:$0xff] %v1582_v24 }
  0xc3   :  { %674 = vrot.lane.b32.xlu1 %v1405_v58, %s1076_s12  ;;  %672 = vrot.lane.b32.xlu0 %v1410_v59, %s1076_s12 }
  0xc5   :  { %v1588_v57 = vpop.permute.xlu1 %377  ;;  %v1590_v52 = vpop.permute.xlu0 %375 }
  0xc6   :  { %3027 = vst [vmem:[#allocation43_spill] sm:$0xff] %v1588_v57  ;;  %3028 = vst [vmem:[#allocation44_spill] sm:$0xff] %v1590_v52 }
  0xc7   :  { %678 = vrot.lane.b32.xlu1 %v1421_v60, %s1076_s12  ;;  %676 = vrot.lane.b32.xlu0 %v1426_v61, %s1076_s12 }
  0xc9   :  { %v1596_v44 = vpop.permute.xlu1 %381  ;;  %v1598_v34 = vpop.permute.xlu0 %379 }
  0xca   :  { %3029 = vst [vmem:[#allocation45_spill] sm:$0xff] %v1596_v44  ;;  %3030 = vst [vmem:[#allocation46_spill] sm:$0xff] %v1598_v34 }
  0xcb   :  { %682 = vrot.lane.b32.xlu1 %v1439_v63, %s1076_s12  ;;  %680 = vrot.lane.b32.xlu0 %v1444_v2, %s1076_s12 }
  0xcd   :  { %v1604_v24 = vpop.permute.xlu1 %410  ;;  %v1606_v57 = vpop.permute.xlu0 %408 }
  0xce   :  { %3031 = vst [vmem:[#allocation47_spill] sm:$0xff] %v1604_v24  ;;  %3032 = vst [vmem:[#allocation48_spill] sm:$0xff] %v1606_v57 }
  0xcf   :  { %712 = vrot.lane.b32.xlu1 %v1371_v53, %s1077_s13  ;;  %684 = vrot.lane.b32.xlu0 %v1458_v4, %s1076_s12 }
  0xd1   :  { %v1612_v44 = vpop.permute.xlu1 %414  ;;  %v1614_v34 = vpop.permute.xlu0 %412 }
  0xd2   :  { %3033 = vst [vmem:[#allocation49_spill] sm:$0xff] %v1612_v44  ;;  %3034 = vst [vmem:[#allocation50_spill] sm:$0xff] %v1614_v34 }
  0xd3   :  { %720 = vrot.lane.b32.xlu1 %v1410_v59, %s1077_s13  ;;  %714 = vrot.lane.b32.xlu0 %v1376_v54, %s1077_s13 }
  0xd5   :  { %v1620_v24 = vpop.permute.xlu1 %418  ;;  %v1622_v57 = vpop.permute.xlu0 %416 }
  0xd6   :  { %3035 = vst [vmem:[#allocation51_spill] sm:$0xff] %v1620_v24  ;;  %3036 = vst [vmem:[#allocation52_spill] sm:$0xff] %v1622_v57 }
  0xd7   :  { %728 = vrot.lane.b32.xlu1 %v1444_v2, %s1077_s13  ;;  %722 = vrot.lane.b32.xlu0 %v1405_v58, %s1077_s13 }
  0xd9   :  { %v1628_v52 = vpop.permute.xlu1 %422  ;;  %v1630_v44 = vpop.permute.xlu0 %420 }
  0xda   :  { %3037 = vst [vmem:[#allocation53_spill] sm:$0xff] %v1628_v52  ;;  %3038 = vst [vmem:[#allocation54_spill] sm:$0xff] %v1630_v44 }
  0xdb   :  { %686 = vrot.lane.b32.xlu1 %v1453_v3, %s1076_s12  ;;  %730 = vrot.lane.b32.xlu0 %v1439_v63, %s1077_s13 }
  0xdd   :  { %v1636_v34 = vpop.permute.xlu1 %426  ;;  %v1638_v24 = vpop.permute.xlu0 %424 }
  0xde   :  { %3039 = vst [vmem:[#allocation55_spill] sm:$0xff] %v1636_v34  ;;  %3040 = vst [vmem:[#allocation56_spill] sm:$0xff] %v1638_v24 }
  0xdf   :  { %724 = vrot.lane.b32.xlu1 %v1426_v61, %s1077_s13  ;;  %716 = vrot.lane.b32.xlu0 %v1387_v55, %s1077_s13 }
  0xe1   :  { %v1644_v57 = vpop.permute.xlu1 %430  ;;  %v1646_v52 = vpop.permute.xlu0 %428 }
  0xe2   :  { %3041 = vst [vmem:[#allocation57_spill] sm:$0xff] %v1644_v57  ;;  %3042 = vst [vmem:[#allocation58_spill] sm:$0xff] %v1646_v52 }
  0xe3   :  { %761 = vrot.lane.b32.xlu1 %v1371_v53, %s1078_s14  ;;  %732 = vrot.lane.b32.xlu0 %v1458_v4, %s1077_s13 }
  0xe5   :  { %v523_v34 = vpop.permute.xlu1 %522  ;;  %v521_v44 = vpop.permute.xlu0 %520 }
  0xe7   :  { %769 = vrot.lane.b32.xlu1 %v1410_v59, %s1078_s14  ;;  %763 = vrot.lane.b32.xlu0 %v1376_v54, %s1078_s14 }
  0xe9   :  { %v527_v24 = vpop.permute.xlu1 %526  ;;  %v525_v62 = vpop.permute.xlu0 %524 }
  0xeb   :  { %777 = vrot.lane.b32.xlu1 %v1444_v2, %s1078_s14  ;;  %771 = vrot.lane.b32.xlu0 %v1405_v58, %s1078_s14 }
  0xed   :  { %v531_v52 = vpop.permute.xlu1 %530  ;;  %v529_v57 = vpop.permute.xlu0 %528 }
  0xee   :  { %v1663_v51 = vsel %vm285_vm12, %v523_v34, %v531_v52  ;;  %v1667_v28 = vsel %vm285_vm12, %v521_v44, %v529_v57 }
  0xef   :  { %718 = vrot.lane.b32.xlu1 %v1392_v56, %s1077_s13  ;;  %779 = vrot.lane.b32.xlu0 %v1439_v63, %s1078_s14 }
  0xf1   :  { %v535_v0 = vpop.permute.xlu1 %534  ;;  %v533_v21 = vpop.permute.xlu0 %532 }
  0xf2   :  { %v1675_v36 = vsel %vm285_vm12, %v527_v24, %v535_v0  ;;  %v1679_v50 = vsel %vm285_vm12, %v525_v62, %v533_v21 }
  0xf3   :  { %734 = vrot.lane.b32.xlu1 %v1453_v3, %s1077_s13  ;;  %726 = vrot.lane.b32.xlu0 %v1421_v60, %s1077_s13 }
  0xf5   :  { %v539_v19 = vpop.permute.xlu1 %538  ;;  %v537_v30 = vpop.permute.xlu0 %536 }
  0xf6   :  { %v545_v18 = vsel %vm285_vm12, %v531_v52, %v539_v19  ;;  %v553_v27 = vsel %vm285_vm12, %v539_v19, %v523_v34  ;;  %v544_v17 = vsel %vm285_vm12, %v529_v57, %v537_v30  ;;  %v552_v23 = vsel %vm285_vm12, %v537_v30, %v521_v44 }
  0xf7   :  { %773 = vrot.lane.b32.xlu1 %v1426_v61, %s1078_s14  ;;  %765 = vrot.lane.b32.xlu0 %v1387_v55, %s1078_s14 }
  0xf9   :  { %v543_v31 = vpop.permute.xlu1 %542  ;;  %v541_v16 = vpop.permute.xlu0 %540 }
  0xfa   :  { %v547_v52 = vsel %vm285_vm12, %v535_v0, %v543_v31  ;;  %v555_v34 = vsel %vm285_vm12, %v543_v31, %v527_v24  ;;  %v1703_v57 = vsel %vm285_vm12, %v533_v21, %v541_v16  ;;  %v554_v44 = vsel %vm285_vm12, %v541_v16, %v525_v62 }
  0xfb   :  { %810 = vrot.lane.b32.xlu1 %v1371_v53, %s1079_s15  ;;  %781 = vrot.lane.b32.xlu0 %v1458_v4, %s1078_s14  ;;  %v559_v31 = vmax.f32 %v1376_v54, %v553_v27  ;;  %v556_v62 = vmax.f32 %v1371_v53, %v552_v23  ;;  %v565_v23 = vmax.f32 %v1392_v56, %v555_v34 }
  0xfc   :  { %v562_v42 = vmax.f32 %v1387_v55, %v554_v44  ;;  %v560_v34 = vmax.f32 %v1405_v58, %v1663_v51  ;;  %v561_v44 = vmax.f32 %v1439_v63, %v545_v18 }
  0xfd   :  { %v571_v19 = vpop.permute.xlu1 %570  ;;  %v569_v30 = vpop.permute.xlu0 %568 }
  0xff   :  { %818 = vrot.lane.b32.xlu1 %v1410_v59, %s1079_s15  ;;  %812 = vrot.lane.b32.xlu0 %v1376_v54, %s1079_s15 }
 0x101   :  { %v575_v0 = vpop.permute.xlu1 %574  ;;  %v573_v24 = vpop.permute.xlu0 %572 }
 0x103   :  { %826 = vrot.lane.b32.xlu1 %v1444_v2, %s1079_s15  ;;  %820 = vrot.lane.b32.xlu0 %v1405_v58, %s1079_s15 }
 0x105   :  { %v579_v16 = vpop.permute.xlu1 %578  ;;  %v577_v21 = vpop.permute.xlu0 %576 }
 0x106   :  { %v597_v47 = vsel %vm334_vm13, %v571_v19, %v579_v16  ;;  %v596_v29 = vsel %vm334_vm13, %v569_v30, %v577_v21 }
 0x107   :  { %v1726_v46 = vmax.f32 %v559_v31, %v597_v47  ;;  %v1728_v32 = vmax.f32 %v556_v62, %v596_v29  ;;  %767 = vrot.lane.b32.xlu1 %v1392_v56, %s1078_s14  ;;  %828 = vrot.lane.b32.xlu0 %v1439_v63, %s1079_s15  ;;  %v558_v62 = vmax.f32 %v1444_v2, %v544_v17 }
 0x109   :  { %v583_v27 = vpop.permute.xlu1 %582  ;;  %v581_v41 = vpop.permute.xlu0 %580 }
 0x10a   :  { %v599_v15 = vsel %vm334_vm13, %v575_v0, %v583_v27  ;;  %v598_v29 = vsel %vm334_vm13, %v573_v24, %v581_v41 }
 0x10b   :  { %v1738_v38 = vmax.f32 %v565_v23, %v599_v15  ;;  %783 = vrot.lane.b32.xlu1 %v1453_v3, %s1078_s14  ;;  %v1744_v47 = vmax.f32 %v562_v42, %v598_v29  ;;  %775 = vrot.lane.b32.xlu0 %v1421_v60, %s1078_s14  ;;  %v557_v15 = vmax.f32 %v1410_v59, %v1667_v28 }
 0x10d   :  { %v587_v31 = vpop.permute.xlu1 %586  ;;  %v585_v29 = vpop.permute.xlu0 %584 }
 0x10e   :  { %v593_v23 = vsel %vm334_vm13, %v579_v16, %v587_v31  ;;  %v601_v42 = vsel %vm334_vm13, %v587_v31, %v571_v19  ;;  %v592_v51 = vsel %vm334_vm13, %v577_v21, %v585_v29  ;;  %v600_v18 = vsel %vm334_vm13, %v585_v29, %v569_v30 }
 0x10f   :  { %v1758_v37 = vmax.f32 %v560_v34, %v593_v23  ;;  %v1760_v14 = vmax.f32 %v561_v44, %v601_v42  ;;  %822 = vrot.lane.b32.xlu1 %v1426_v61, %s1079_s15  ;;  %v1768_v28 = vmax.f32 %v557_v15, %v592_v51  ;;  %v1770_v17 = vmax.f32 %v558_v62, %v600_v18  ;;  %v1833_v42 = vld [vmem:[%s2871_s0 + $0x20] sm:$0xff] }
 0x110   :  { %814 = vrot.lane.b32.xlu0 %v1387_v55, %s1079_s15  ;;  %v566_v19 = vmax.f32 %v1421_v60, %v1675_v36  ;;  %v567_v16 = vmax.f32 %v1453_v3, %v547_v52  ;;  %v563_v21 = vmax.f32 %v1426_v61, %v1679_v50  ;;  %v564_v30 = vmax.f32 %v1458_v4, %v1703_v57 }
 0x111   :  { %v591_v34 = vpop.permute.xlu1 %590  ;;  %v589_v15 = vpop.permute.xlu0 %588  ;;  %3046 = vst [vmem:[#allocation62_spill] sm:$0xff] %v1833_v42  ;;  %v102_v51 = vsub.f32 %v1833_v42, %v1181_v33  ;;  %v1900_v42 = vld [vmem:[%s2871_s0 + $0x38] sm:$0xff] }
 0x112   :  { %v595_v44 = vsel %vm334_vm13, %v583_v27, %v591_v34  ;;  %v603_v31 = vsel %vm334_vm13, %v591_v34, %v575_v0  ;;  %v594_v36 = vsel %vm334_vm13, %v581_v41, %v589_v15  ;;  %v602_v50 = vsel %vm334_vm13, %v589_v15, %v573_v24  ;;  %3050 = vst [vmem:[#allocation66_spill] sm:$0xff] %v1900_v42 }
 0x113   :  { %v1785_v62 = vmax.f32 %v566_v19, %v595_v44  ;;  %v1787_v23 = vmax.f32 %v567_v16, %v603_v31  ;;  %859 = vrot.lane.b32.xlu1 %v1371_v53, %s1080_s16  ;;  %v1795_v52 = vmax.f32 %v563_v21, %v594_v36  ;;  %v1797_v57 = vmax.f32 %v564_v30, %v602_v50  ;;  %v1814_v53 = vld [vmem:[%s2871_s0] sm:$0xff]  ;;  %v1868_v30 = vld [vmem:[%s2871_s0 + $0x28] sm:$0xff] }
 0x114   :  { %830 = vrot.lane.b32.xlu0 %v1458_v4, %s1079_s15  ;;  %3043 = vst [vmem:[#allocation59_spill] sm:$0xff] %v1814_v53  ;;  %3048 = vst [vmem:[#allocation64_spill] sm:$0xff] %v1868_v30  ;;  %v103_v36 = vsub.f32 %v1868_v30, %v1237_v43  ;;  %v114_v50 = vand.u32 2147483647, %v102_v51  ;;  %v1889_v43 = vld [vmem:[%s2871_s0 + $0x30] sm:$0xff] }
 0x115   :  { %v619_v0 = vpop.permute.xlu1 %618  ;;  %v617_v27 = vpop.permute.xlu0 %616  ;;  %3049 = vst [vmem:[#allocation65_spill] sm:$0xff] %v1889_v43 }
 0x116   :  { %v115_v30 = vand.u32 2147483647, %v103_v36 }
 0x117   :  { %867 = vrot.lane.b32.xlu1 %v1410_v59, %s1080_s16  ;;  %v98_v59 = vsub.f32 %v1814_v53, %v1132_v22 }
 0x118   :  { %861 = vrot.lane.b32.xlu0 %v1376_v54, %s1080_s16  ;;  %v1823_v54 = vld [vmem:[%s2871_s0 + $0x8] sm:$0xff] }
 0x119   :  { %v1805_v41 = vpop.permute.xlu1 %622  ;;  %v1807_v24 = vpop.permute.xlu0 %620  ;;  %3044 = vst [vmem:[#allocation60_spill] sm:$0xff] %v1823_v54  ;;  %v99_v22 = vsub.f32 %v1823_v54, %v1190_v35  ;;  %v110_v35 = vand.u32 2147483647, %v98_v59 }
 0x11b   :  { %875 = vrot.lane.b32.xlu1 %v1444_v2, %s1080_s16  ;;  %v1828_v2 = vld [vmem:[%s2871_s0 + $0x18] sm:$0xff]  ;;  %v111_v31 = vand.u32 2147483647, %v99_v22  ;;  %v1905_v22 = vld [vmem:[%s2871_s0 + $0x40] sm:$0xff] }
 0x11c   :  { %869 = vrot.lane.b32.xlu0 %v1405_v58, %s1080_s16  ;;  %3045 = vst [vmem:[#allocation61_spill] sm:$0xff] %v1828_v2  ;;  %v101_v29 = vsub.f32 %v1828_v2, %v1148_v26  ;;  %v1857_v26 = vld [vmem:[%s2871_s0 + $0x10] sm:$0xff]  ;;  %3051 = vst [vmem:[#allocation67_spill] sm:$0xff] %v1905_v22 }
 0x11d   :  { %v627_v58 = vpop.permute.xlu1 %626  ;;  %v625_v19 = vpop.permute.xlu0 %624  ;;  %3047 = vst [vmem:[#allocation63_spill] sm:$0xff] %v1857_v26  ;;  %v100_v21 = vsub.f32 %v1857_v26, %v1246_v45  ;;  %v131_v26 = vadd.f32 %v114_v50, %v111_v31  ;;  %v106_v31 = vsub.f32 %v1905_v22, %v1270_v49 }
 0x11e   :  { %v1844_v18 = vsel %vm383_vm15, %v619_v0, %v627_v58  ;;  %v1850_v34 = vsel %vm383_vm15, %v617_v27, %v625_v19  ;;  %v113_v15 = vand.u32 2147483647, %v101_v29  ;;  %v104_v29 = vsub.f32 %v1889_v43, %v1125_v20 }
 0x11f   :  { %816 = vrot.lane.b32.xlu1 %v1392_v56, %s1079_s15  ;;  %v112_v45 = vand.u32 2147483647, %v100_v21  ;;  %v105_v21 = vsub.f32 %v1900_v42, %v1216_v40  ;;  %v3103_v42 = vld [vmem:[#allocation3_spill] sm:$0xff] }
 0x120   :  { %877 = vrot.lane.b32.xlu0 %v1439_v63, %s1080_s16  ;;  %v122_v16 = vadd.f32 %v113_v15, %v110_v35 }
 0x121   :  { %v631_v44 = vpop.permute.xlu1 %630  ;;  %v629_v59 = vpop.permute.xlu0 %628 }
 0x122   :  { %v1875_v63 = vsel %vm383_vm15, %v1805_v41, %v631_v44  ;;  %v1882_v33 = vsel %vm383_vm15, %v1807_v24, %v629_v59 }
 0x123   :  { %832 = vrot.lane.b32.xlu1 %v1453_v3, %s1079_s15 }
 0x124   :  { %824 = vrot.lane.b32.xlu0 %v1421_v60, %s1079_s15 }
 0x125   :  { %v635_v51 = vpop.permute.xlu1 %634  ;;  %v633_v35 = vpop.permute.xlu0 %632 }
 0x126   :  { %v1909_v54 = vsel %vm383_vm15, %v627_v58, %v635_v51  ;;  %v649_v20 = vsel %vm383_vm15, %v635_v51, %v619_v0  ;;  %v1922_v50 = vsel %vm383_vm15, %v625_v19, %v633_v35  ;;  %v648_v58 = vsel %vm383_vm15, %v633_v35, %v617_v27  ;;  %v1943_v27 = vld [vmem:[%s2871_s0 + $0x58] sm:$0xff] }
 0x127   :  { %v655_v15 = vmax.f32 %v1726_v46, %v649_v20  ;;  %871 = vrot.lane.b32.xlu1 %v1426_v61, %s1080_s16  ;;  %v652_v40 = vmax.f32 %v1728_v32, %v648_v58  ;;  %v116_v46 = vand.u32 2147483647, %v104_v29  ;;  %v117_v0 = vand.u32 2147483647, %v105_v21  ;;  %3052 = vst [vmem:[#allocation68_spill] sm:$0xff] %v1943_v27 }
 0x128   :  { %863 = vrot.lane.b32.xlu0 %v1387_v55, %s1080_s16  ;;  %v140_v20 = vadd.f32 %v115_v30, %v112_v45  ;;  %v118_v19 = vand.u32 2147483647, %v106_v31  ;;  %v1948_v55 = vld [vmem:[%s2871_s0 + $0x48] sm:$0xff]  ;;  %v1953_v30 = vld [vmem:[%s2871_s0 + $0x50] sm:$0xff] }
 0x129   :  { %v639_v51 = vpop.permute.xlu1 %638  ;;  %v637_v32 = vpop.permute.xlu0 %636  ;;  %3053 = vst [vmem:[#allocation69_spill] sm:$0xff] %v1948_v55  ;;  %3054 = vst [vmem:[#allocation70_spill] sm:$0xff] %v1953_v30  ;;  %v132_v31 = vadd.f32 %v131_v26, %v117_v0 }
 0x12a   :  { %v1935_v36 = vsel %vm383_vm15, %v631_v44, %v639_v51  ;;  %v651_v61 = vsel %vm383_vm15, %v639_v51, %v1805_v41  ;;  %v1960_v45 = vsel %vm383_vm15, %v629_v59, %v637_v32  ;;  %v650_v29 = vsel %vm383_vm15, %v637_v32, %v1807_v24 }
 0x12b   :  { %v661_v44 = vmax.f32 %v1738_v38, %v651_v61  ;;  %865 = vrot.lane.b32.xlu1 %v1392_v56, %s1080_s16  ;;  %v658_v35 = vmax.f32 %v1744_v47, %v650_v29  ;;  %v123_v38 = vadd.f32 %v122_v16, %v116_v46  ;;  %v141_v59 = vadd.f32 %v140_v20, %v118_v19 }
 0x12c   :  { %879 = vrot.lane.b32.xlu0 %v1458_v4, %s1080_s16  ;;  %v109_v51 = vsub.f32 %v1943_v27, %v1265_v48  ;;  %v107_v24 = vsub.f32 %v1948_v55, %v1143_v25  ;;  %v108_v56 = vsub.f32 %v1953_v30, %v1211_v39 }
 0x12d   :  { %v667_v58 = vpop.permute.xlu1 %666  ;;  %v665_v47 = vpop.permute.xlu0 %664 }
 0x12e   :  { %v121_v61 = vand.u32 2147483647, %v109_v51  ;;  %v119_v32 = vand.u32 2147483647, %v107_v24  ;;  %v120_v4 = vand.u32 2147483647, %v108_v56 }
 0x12f   :  { %881 = vrot.lane.b32.xlu1 %v1453_v3, %s1080_s16 }
 0x130   :  { %873 = vrot.lane.b32.xlu0 %v1421_v60, %s1080_s16  ;;  %v142_v26 = vadd.f32 %v141_v59, %v121_v61  ;;  %v124_v48 = vadd.f32 %v123_v38, %v119_v32  ;;  %v133_v46 = vadd.f32 %v132_v31, %v120_v4  ;;  %v1081_v60 = vmov 1966171168  }
 0x131   :  { %v1982_v16 = vpop.permute.xlu1 %670  ;;  %v669_v0 = vpop.permute.xlu0 %668  ;;  %v154_v41 = vunpack.c.l.s4 %v1081_v60 }
 0x132   :  { %v143_v25 = vrot.slane %v142_v26, 4  ;;  %v125_v20 = vrot.slane %v124_v48, 4  ;;  %v134_v19 = vrot.slane %v133_v46, 4 }
 0x134   :  { %v144_v29 = vadd.f32 %v143_v25, %v142_v26  ;;  %v126_v3 = vadd.f32 %v125_v20, %v124_v48  ;;  %v135_v51 = vadd.f32 %v134_v19, %v133_v46  ;;  %v3055_v26 = vlaneseq }
 0x135   :  { %v675_v39 = vpop.permute.xlu1 %674  ;;  %v673_v56 = vpop.permute.xlu0 %672  ;;  %v155_v19 = vunpack.c.0.s8 %v154_v41 }
 0x136   :  { %v693_v24 = vsel %vm432_vm0, %v667_v58, %v675_v39  ;;  %v692_v38 = vsel %vm432_vm0, %v665_v47, %v673_v56  ;;  %v145_v31 = vrot.slane %v144_v29, 2  ;;  %v127_v59 = vrot.slane %v126_v3, 2 }
 0x137   :  { %v1987_v21 = vmax.f32 %v655_v15, %v693_v24  ;;  %v1991_v61 = vmax.f32 %v652_v40, %v692_v38  ;;  %v136_v32 = vrot.slane %v135_v51, 2  ;;  %v157_v48 = vshrl.u32 %v3055_v26, 7 }
 0x138   :  { %v146_v46 = vadd.f32 %v145_v31, %v144_v29  ;;  %v128_v25 = vadd.f32 %v127_v59, %v126_v3  ;;  %vm2001_vm2 = vcmp.lt.s32.totalorder %v3055_v26, 384  ;;  %v3056_v24 = vmov 0 }
 0x139   :  { %v1993_v4 = vpop.permute.xlu1 %678  ;;  %v677_v20 = vpop.permute.xlu0 %676  ;;  %v3057_v24 = vsel %vm2001_vm2, 4294967295, %v3056_v24  ;;  %v137_v40 = vadd.f32 %v136_v32, %v135_v51  ;;  %v2948_v3 = vmov 0.0   ;;  %v2027_v30 = vsub.s32 %v155_v19, %v157_v48 }
 0x13a   :  { %v695_v15 = vsel %vm432_vm0, %v1982_v16, %v1993_v4  ;;  %3058 = vst [vmem:[#allocation71_spill] sm:$0xff] %v3057_v24  ;;  %v694_v38 = vsel %vm432_vm0, %v669_v0, %v677_v20  ;;  %v147_v29 = vrot.slane %v146_v46, 1  ;;  %71 = vst.msk [vmem:[%s2872_s2] sm:$0x7] %vm2001_vm2, %v2948_v3  ;;  %v3063_v48 = vmax.f32 %v1768_v28, %v1850_v34 }
 0x13b   :  { %v2005_v60 = vmax.f32 %v661_v44, %v695_v15  ;;  %72 = vst.msk [vmem:[%s2873_s3] sm:$0x7] %vm2001_vm2, %v2948_v3  ;;  %v129_v44 = vrot.slane %v128_v25, 1  ;;  %v2021_v41 = vmax.f32 %v658_v35, %v694_v38  ;;  %v138_v51 = vrot.slane %v137_v40, 1  ;;  %3060 = vst [vmem:[#allocation73_spill] sm:$0xff] %v2027_v30 }
 0x13c   :  { %v148_v59 = vadd.f32 %v147_v29, %v146_v46  ;;  %v3061_v3 = vmax.f32 %v1758_v37, %v1844_v18  ;;  %v3062_v35 = vmax.f32 %v1760_v14, %v1909_v54  ;;  %v3064_v37 = vmax.f32 %v1770_v17, %v1922_v50 }
 0x13d   :  { %3059 = vst [vmem:[#allocation72_spill] sm:$0xff] %v2021_v41  ;;  %v683_v31 = vpop.permute.xlu1 %682  ;;  %v130_v32 = vadd.f32 %v129_v44, %v128_v25  ;;  %v681_v49 = vpop.permute.xlu0 %680  ;;  %v139_v55 = vadd.f32 %v138_v51, %v137_v40  ;;  %v3065_v28 = vmax.f32 %v1795_v52, %v1882_v33  ;;  %v3067_v34 = vmax.f32 %v1797_v57, %v1960_v45  ;;  %v3109_v41 = vld [vmem:[#allocation44_spill] sm:$0xff] }
 0x13e   :  { %v689_v26 = vsel %vm432_vm0, %v675_v39, %v683_v31  ;;  %v697_v15 = vsel %vm432_vm0, %v683_v31, %v667_v58  ;;  %v688_v39 = vsel %vm432_vm0, %v673_v56, %v681_v49  ;;  %v696_v58 = vsel %vm432_vm0, %v681_v49, %v665_v47 }
 0x13f   :  { %v2032_v27 = vmax.f32 %v3061_v3, %v689_v26  ;;  %v2037_v46 = vmax.f32 %v3062_v35, %v697_v15  ;;  %v701_v25 = vmax.f32 %v3063_v48, %v688_v39  ;;  %v702_v18 = vmax.f32 %v3064_v37, %v696_v58 }
 0x140   :  { %v166_v19 = vrot.slane %v148_v59, %v2027_v30  ;;  %v152_v40 = vcombine.low %v130_v32, %v139_v55 }
 0x141   :  { %v713_v14 = vpop.permute.xlu1 %712  ;;  %v685_v54 = vpop.permute.xlu0 %684 }
 0x142   :  { %v159_v38 = vrot.slane %v152_v40, %v2027_v30  ;;  %v690_v56 = vsel %vm432_vm0, %v677_v20, %v685_v54  ;;  %v698_v49 = vsel %vm432_vm0, %v685_v54, %v669_v0  ;;  %v97_v20 = vld [vmem:[%s2872_s2] sm:$0x7] }
 0x143   :  { %v2059_v17 = vmax.f32 %v3065_v28, %v690_v56  ;;  %v2064_v50 = vmax.f32 %v3067_v34, %v698_v49 }
 0x144   :  { %v167_v55 = vcombine.low %v159_v38, %v166_v19 }
 0x145   :  { %3066 = vst [vmem:[#allocation74_spill] sm:$0xff] %v2059_v17  ;;  %3068 = vst [vmem:[#allocation75_spill] sm:$0xff] %v2064_v50  ;;  %v721_v47 = vpop.permute.xlu1 %720  ;;  %v715_v29 = vpop.permute.xlu0 %714  ;;  %v3105_v50 = vld [vmem:[#allocation32_spill] sm:$0xff] }
 0x146   :  { %v741_v0 = vsel %vm2971_vm3, %v713_v14, %v721_v47  ;;  %v174_v3 = vrot.slane %v167_v55, %v2027_v30 }
 0x147   :  { %v750_v52 = vmax.f32 %v701_v25, %v741_v0  ;;  %v3071_v25 = vmax.f32 %v1787_v23, %v1935_v36  ;;  %v3091_v23 = vld [vmem:[#allocation22_spill] sm:$0xff] }
 0x148   :  { %v176_v33 = vadd.f32 %v174_v3, %v97_v20 }
 0x149   :  { %v729_v44 = vpop.permute.xlu1 %728  ;;  %v723_v51 = vpop.permute.xlu0 %722 }
 0x14a   :  { %v737_v57 = vsel %vm2971_vm3, %v721_v47, %v729_v44  ;;  %v745_v45 = vsel %vm2971_vm3, %v729_v44, %v713_v14  ;;  %181 = vst.msk [vmem:[%s2872_s2] sm:$0x7] %vm2001_vm2, %v176_v33  ;;  %v2084_v32 = vsel %vm2971_vm3, %v715_v29, %v723_v51 }
 0x14b   :  { %v749_v31 = vmax.f32 %v1991_v61, %v745_v45  ;;  %v751_v59 = vmax.f32 %v702_v18, %v737_v57  ;;  %v3069_v61 = vmax.f32 %v1785_v62, %v1875_v63 }
 0x14d   :  { %v687_v15 = vpop.permute.xlu1 %686  ;;  %v731_v58 = vpop.permute.xlu0 %730 }
 0x14e   :  { %v691_v35 = vsel %vm432_vm0, %v1993_v4, %v687_v15  ;;  %v699_v39 = vsel %vm432_vm0, %v687_v15, %v1982_v16  ;;  %v738_v18 = vsel %vm2971_vm3, %v723_v51, %v731_v58  ;;  %v746_v4 = vsel %vm2971_vm3, %v731_v58, %v715_v29 }
 0x14f   :  { %v2097_v48 = vmax.f32 %v3069_v61, %v691_v35  ;;  %v2102_v37 = vmax.f32 %v3071_v25, %v699_v39  ;;  %v752_v19 = vmax.f32 %v1987_v21, %v746_v4  ;;  %v754_v16 = vmax.f32 %v2037_v46, %v738_v18 }
 0x150   :  { %v291_v58 = vsel %vm285_vm12, %v1470_v8, %v1476_v9  ;;  %v290_v61 = vsel %vm285_vm12, %v1462_v6, %v1478_v10  ;;  %v2179_v25 = vsel %vm285_vm12, %v1468_v7, %v1484_v11  ;;  %v2187_v4 = vsel %vm285_vm12, %v1460_v5, %v1486_v12 }
 0x151   :  { %3070 = vst [vmem:[#allocation76_spill] sm:$0xff] %v2097_v48  ;;  %3072 = vst [vmem:[#allocation77_spill] sm:$0xff] %v2102_v37  ;;  %v725_v40 = vpop.permute.xlu1 %724  ;;  %v717_v14 = vpop.permute.xlu0 %716  ;;  %v2233_v46 = vsel %vm285_vm12, %v1486_v12, %v3091_v23  ;;  %v3098_v12 = vld [vmem:[#allocation25_spill] sm:$0xff]  ;;  %v3121_v48 = vld [vmem:[#allocation40_spill] sm:$0xff] }
 0x152   :  { %v2112_v62 = vsel %vm2971_vm3, %v717_v14, %v725_v40 }
 0x153   :  { %3073 = vst [vmem:[#allocation78_spill] sm:$0xff] %v2112_v62 }
 0x155   :  { %v762_v63 = vpop.permute.xlu1 %761  ;;  %v733_v36 = vpop.permute.xlu0 %732 }
 0x156   :  { %v2118_v54 = vsel %vm2971_vm3, %v725_v40, %v733_v36  ;;  %v2122_v21 = vsel %vm2971_vm3, %v733_v36, %v717_v14  ;;  %v3081_v40 = vld [vmem:[#allocation20_spill] sm:$0xff] }
 0x157   :  { %3074 = vst [vmem:[#allocation79_spill] sm:$0xff] %v2118_v54  ;;  %3075 = vst [vmem:[#allocation80_spill] sm:$0xff] %v2122_v21  ;;  %v286_v14 = vsel %vm285_vm12, %v1478_v10, %v3081_v40  ;;  %v3082_v36 = vld [vmem:[#allocation8_spill] sm:$0xff]  ;;  %v3086_v10 = vld [vmem:[#allocation11_spill] sm:$0xff] }
 0x159   :  { %v770_v56 = vpop.permute.xlu1 %769  ;;  %v764_v28 = vpop.permute.xlu0 %763 }
 0x15a   :  { %v790_v49 = vsel %vm2972_vm5, %v762_v63, %v770_v56 }
 0x15b   :  { %v2131_v34 = vmax.f32 %v749_v31, %v790_v49  ;;  %v3083_v49 = vld [vmem:[#allocation9_spill] sm:$0xff] }
 0x15d   :  { %v778_v55 = vpop.permute.xlu1 %777  ;;  %v2137_v0 = vpop.permute.xlu0 %771 }
 0x15e   :  { %v786_v47 = vsel %vm2972_vm5, %v770_v56, %v778_v55  ;;  %v794_v20 = vsel %vm2972_vm5, %v778_v55, %v762_v63  ;;  %v791_v33 = vsel %vm2972_vm5, %v764_v28, %v2137_v0  ;;  %v294_v63 = vsel %vm285_vm12, %v3081_v40, %v1462_v6  ;;  %v3088_v6 = vld [vmem:[#allocation13_spill] sm:$0xff]  ;;  %v3102_v55 = vld [vmem:[#allocation31_spill] sm:$0xff] }
 0x15f   :  { %v2139_v29 = vmax.f32 %v750_v52, %v786_v47  ;;  %v2141_v3 = vmax.f32 %v751_v59, %v794_v20  ;;  %v2146_v44 = vmax.f32 %v752_v19, %v791_v33  ;;  %v287_v19 = vsel %vm285_vm12, %v1476_v9, %v1492_v13  ;;  %v3084_v9 = vld [vmem:[#allocation10_spill] sm:$0xff]  ;;  %v3085_v47 = vld [vmem:[#allocation21_spill] sm:$0xff]  ;;  %v3099_v20 = vld [vmem:[#allocation15_spill] sm:$0xff] }
 0x160   :  { %v302_v56 = vmax.f32 %v3082_v36, %v291_v58  ;;  %v3087_v33 = vld [vmem:[#allocation6_spill] sm:$0xff]  ;;  %v303_v40 = vmax.f32 %v3088_v6, %v287_v19  ;;  %v2223_v58 = vsel %vm285_vm12, %v1484_v11, %v3085_v47  ;;  %v3089_v36 = vld [vmem:[#allocation4_spill] sm:$0xff]  ;;  %v296_v19 = vsel %vm285_vm12, %v3091_v23, %v1460_v5 }
 0x161   :  { %v2148_v57 = vpop.permute.xlu1 %718  ;;  %v2150_v45 = vpop.permute.xlu0 %779  ;;  %v3095_v6 = vld [vmem:[#allocation28_spill] sm:$0xff]  ;;  %v3100_v23 = vld [vmem:[#allocation30_spill] sm:$0xff]  ;;  %v304_v43 = vmax.f32 %v3103_v42, %v296_v19  ;;  %v3106_v42 = vld [vmem:[#allocation35_spill] sm:$0xff] }
 0x162   :  { %v795_v51 = vsel %vm2972_vm5, %v2150_v45, %v764_v28  ;;  %v299_v28 = vmax.f32 %v3083_v49, %v290_v61  ;;  %v298_v49 = vmax.f32 %v3089_v36, %v294_v63  ;;  %v3104_v5 = vld [vmem:[#allocation16_spill] sm:$0xff]  ;;  %v335_v2 = vsel %vm334_vm13, %v3095_v6, %v3105_v50  ;;  %v3107_v19 = vld [vmem:[#allocation43_spill] sm:$0xff] }
 0x163   :  { %v2155_v31 = vmax.f32 %v754_v16, %v795_v51  ;;  %v295_v16 = vsel %vm285_vm12, %v1492_v13, %v1470_v8  ;;  %v297_v8 = vsel %vm285_vm12, %v3085_v47, %v1468_v7  ;;  %v3090_v7 = vld [vmem:[#allocation14_spill] sm:$0xff]  ;;  %v3093_v47 = vld [vmem:[#allocation27_spill] sm:$0xff]  ;;  %v306_v54 = vmax.f32 %v3104_v5, %v2233_v46 }
 0x164   :  { %v301_v51 = vmax.f32 %v3087_v33, %v295_v16  ;;  %v300_v38 = vmax.f32 %v3090_v7, %v286_v14  ;;  %v3092_v16 = vld [vmem:[#allocation5_spill] sm:$0xff]  ;;  %v3094_v33 = vld [vmem:[#allocation23_spill] sm:$0xff]  ;;  %v3096_v14 = vld [vmem:[#allocation24_spill] sm:$0xff]  ;;  %v336_v24 = vsel %vm334_vm13, %v3093_v47, %v3102_v55  ;;  %v393_v46 = vsel %vm383_vm15, %v3107_v19, %v3106_v42 }
 0x165   :  { %3076 = vst [vmem:[#allocation81_spill] sm:$0xff] %v2155_v31  ;;  %v2157_v52 = vpop.permute.xlu1 %734  ;;  %v2159_v59 = vpop.permute.xlu0 %726  ;;  %v307_v11 = vmax.f32 %v3092_v16, %v297_v8  ;;  %v340_v63 = vsel %vm334_vm13, %v3094_v33, %v3093_v47  ;;  %v339_v36 = vsel %vm334_vm13, %v3096_v14, %v3095_v6  ;;  %v3097_v7 = vld [vmem:[#allocation29_spill] sm:$0xff]  ;;  %v3101_v8 = vld [vmem:[#allocation26_spill] sm:$0xff]  ;;  %v344_v30 = vsel %vm334_vm13, %v3102_v55, %v3094_v33  ;;  %v3108_v6 = vld [vmem:[#allocation36_spill] sm:$0xff] }
 0x166   :  { %3077 = vst [vmem:[#allocation82_spill] sm:$0xff] %v2159_v59  ;;  %v342_v26 = vsel %vm334_vm13, %v3098_v12, %v3097_v7  ;;  %v341_v16 = vsel %vm334_vm13, %v3101_v8, %v3100_v23  ;;  %v343_v47 = vsel %vm334_vm13, %v3105_v50, %v3096_v14  ;;  %v350_v55 = vmax.f32 %v301_v51, %v340_v63  ;;  %v3111_v51 = vld [vmem:[#allocation46_spill] sm:$0xff]  ;;  %v3122_v59 = vld [vmem:[#allocation55_spill] sm:$0xff] }
 0x167   :  { %v347_v33 = vmax.f32 %v298_v49, %v339_v36  ;;  %v2281_v62 = vmax.f32 %v307_v11, %v342_v26  ;;  %v353_v5 = vmax.f32 %v304_v43, %v341_v16  ;;  %v351_v17 = vmax.f32 %v302_v56, %v336_v24  ;;  %v3112_v49 = vld [vmem:[#allocation51_spill] sm:$0xff] }
 0x168   :  { %v352_v21 = vmax.f32 %v303_v40, %v344_v30  ;;  %v392_v37 = vsel %vm383_vm15, %v3109_v41, %v3108_v6  ;;  %v348_v50 = vmax.f32 %v299_v28, %v335_v2  ;;  %v349_v14 = vmax.f32 %v300_v38, %v343_v47  ;;  %v3113_v11 = vld [vmem:[#allocation47_spill] sm:$0xff]  ;;  %v3115_v30 = vld [vmem:[#allocation33_spill] sm:$0xff]  ;;  %v3117_v28 = vld [vmem:[#allocation52_spill] sm:$0xff] }
 0x169   :  { %v2161_v15 = vpop.permute.xlu1 %773  ;;  %v2163_v35 = vpop.permute.xlu0 %765  ;;  %v438_v63 = vsel %vm432_vm0, %v3113_v11, %v3112_v49  ;;  %v338_v24 = vsel %vm334_vm13, %v3097_v7, %v3115_v30  ;;  %v3116_v56 = vld [vmem:[#allocation39_spill] sm:$0xff]  ;;  %v399_v38 = vmax.f32 %v350_v55, %v393_v46  ;;  %v3118_v40 = vld [vmem:[#allocation48_spill] sm:$0xff]  ;;  %v346_v47 = vsel %vm334_vm13, %v3115_v30, %v3098_v12  ;;  %v3120_v55 = vld [vmem:[#allocation50_spill] sm:$0xff] }
 0x16a   :  { %3078 = vst [vmem:[#allocation83_spill] sm:$0xff] %v2161_v15  ;;  %3079 = vst [vmem:[#allocation84_spill] sm:$0xff] %v2163_v35  ;;  %v389_v2 = vsel %vm383_vm15, %v3106_v42, %v3116_v56  ;;  %v437_v36 = vsel %vm432_vm0, %v3118_v40, %v3117_v28  ;;  %v385_v7 = vsel %vm383_vm15, %v3116_v56, %v3107_v19  ;;  %v3119_v42 = vld [vmem:[#allocation54_spill] sm:$0xff]  ;;  %vm2973_vm5 = vcmp.lt.s32.totalorder %v1104_v1, 4 }
 0x16b   :  { %v439_v46 = vsel %vm432_vm0, %v3120_v55, %v3119_v42  ;;  %v388_v31 = vsel %vm383_vm15, %v3108_v6, %v3121_v48  ;;  %v448_v15 = vmax.f32 %v399_v38, %v438_v63  ;;  %v434_v12 = vsel %vm432_vm0, %v3112_v49, %v3122_v59  ;;  %v3124_v63 = vld [vmem:[#allocation56_spill] sm:$0xff] }
 0x16c   :  { %v400_v30 = vmax.f32 %v351_v17, %v389_v2  ;;  %v442_v19 = vsel %vm432_vm0, %v3122_v59, %v3113_v11  ;;  %v401_v49 = vmax.f32 %v352_v21, %v385_v7  ;;  %v397_v11 = vmax.f32 %v348_v50, %v388_v31  ;;  %v2369_v2 = vld [vmem:[%s2870_s1 + $0x18] sm:$0xff] }
 0x16d   :  { %v2165_v39 = vpop.permute.xlu1 %810  ;;  %v2181_v18 = vpop.permute.xlu0 %781  ;;  %v441_v21 = vsel %vm432_vm0, %v3124_v63, %v3118_v40  ;;  %vm460_vm6 = vcmp.ge.f32.partialorder %v2369_v2, %v448_v15  ;;  %v3126_v31 = vld [vmem:[#allocation41_spill] sm:$0xff]  ;;  %v3129_v40 = vmax.f32 %v3086_v10, %v2187_v4 }
 0x16e   :  { %3080 = vst [vmem:[#allocation85_spill] sm:$0xff] %v2181_v18  ;;  %v3110_v18 = vld [vmem:[#allocation38_spill] sm:$0xff]  ;;  %v3127_v50 = vld [vmem:[#allocation37_spill] sm:$0xff]  ;;  %vm2414_vm12 = vmand %vm1136_vm8, %vm460_vm6 }
 0x16f   :  { %v394_v26 = vsel %vm383_vm15, %v3111_v51, %v3110_v18  ;;  %v391_v38 = vsel %vm383_vm15, %v3127_v50, %v3126_v31  ;;  %v3130_v7 = vld [vmem:[#allocation45_spill] sm:$0xff] }
 0x170   :  { %v402_v35 = vmax.f32 %v353_v5, %v394_v26  ;;  %v3123_v5 = vld [vmem:[#allocation34_spill] sm:$0xff] }
 0x171   :  { %v2213_v13 = vpop.permute.xlu1 %818  ;;  %v2225_v61 = vpop.permute.xlu0 %812  ;;  %v337_v26 = vsel %vm334_vm13, %v3100_v23, %v3123_v5  ;;  %v345_v59 = vsel %vm334_vm13, %v3123_v5, %v3101_v8  ;;  %v450_v8 = vmax.f32 %v401_v49, %v442_v19  ;;  %v387_v19 = vsel %vm383_vm15, %v3126_v31, %v3130_v7  ;;  %v2421_v49 = vld [vmem:[%s2870_s1 + $0x20] sm:$0xff] }
 0x172   :  { %v451_v17 = vmax.f32 %v402_v35, %v439_v46  ;;  %v3125_v35 = vmax.f32 %v3084_v9, %v2179_v25  ;;  %v2383_v9 = vld [vmem:[%s2870_s1] sm:$0xff]  ;;  %v395_v46 = vsel %vm383_vm15, %v3130_v7, %v3127_v50  ;;  %v355_v10 = vmax.f32 %v306_v54, %v345_v59  ;;  %v3138_v59 = vld [vmem:[#allocation49_spill] sm:$0xff] }
 0x174   :  { %v357_v23 = vmax.f32 %v3125_v35, %v338_v24 }
 0x175   :  { %v2266_v22 = vpop.permute.xlu1 %826  ;;  %v2279_v53 = vpop.permute.xlu0 %820 }
 0x176   :  { %v406_v54 = vmax.f32 %v357_v23, %v391_v38  ;;  %v2473_v23 = vld [vmem:[%s2870_s1 + $0x10] sm:$0xff] }
 0x179   :  { %v2299_v43 = vpop.permute.xlu1 %767  ;;  %v2313_v16 = vpop.permute.xlu0 %828 }
 0x17a   :  { %3114 = vst [vmem:[#allocation20_spill] sm:$0xff] %v2299_v43  ;;  %v396_v43 = vmax.f32 %v347_v33, %v392_v37  ;;  %v384_v37 = vsel %vm383_vm15, %v3121_v48, %v3109_v41  ;;  %v433_v41 = vsel %vm432_vm0, %v3117_v28, %v3124_v63  ;;  %v3128_v28 = vld [vmem:[#allocation42_spill] sm:$0xff]  ;;  %v405_v63 = vmax.f32 %v2281_v62, %v395_v46 }
 0x17b   :  { %v398_v56 = vmax.f32 %v349_v14, %v384_v37  ;;  %v390_v25 = vsel %vm383_vm15, %v3110_v18, %v3128_v28  ;;  %v446_v14 = vmax.f32 %v397_v11, %v433_v41  ;;  %v2398_v18 = vld [vmem:[%s2870_s1 + $0x30] sm:$0xff]  ;;  %v3131_v37 = vmax.f32 %v3099_v20, %v2223_v58  ;;  %v3137_v41 = vld [vmem:[#allocation53_spill] sm:$0xff]  ;;  %v2458_v11 = vld [vmem:[%s2870_s1 + $0x8] sm:$0xff] }
 0x17c   :  { %v445_v33 = vmax.f32 %v396_v43, %v437_v36  ;;  %v449_v43 = vmax.f32 %v400_v30, %v434_v12  ;;  %v354_v36 = vmax.f32 %v3129_v40, %v337_v26  ;;  %vm463_vm10 = vcmp.ge.f32.partialorder %v2398_v18, %v451_v17 }
 0x17d   :  { %v2343_v6 = vpop.permute.xlu1 %783  ;;  %v2353_v48 = vpop.permute.xlu0 %775  ;;  %v447_v12 = vmax.f32 %v398_v56, %v441_v21  ;;  %v358_v4 = vmax.f32 %v3131_v37, %v346_v47  ;;  %v386_v15 = vsel %vm383_vm15, %v3128_v28, %v3111_v51  ;;  %v2439_v47 = vld [vmem:[%s2870_s1 + $0x28] sm:$0xff]  ;;  %v440_v51 = vsel %vm432_vm0, %v3138_v59, %v3137_v41  ;;  %vm2451_vm15 = vmand %vm1136_vm8, %vm463_vm10  ;;  %v3144_v56 = vld [vmem:[#allocation57_spill] sm:$0xff] }
 0x17e   :  { %vm457_vm9 = vcmp.ge.f32.partialorder %v2383_v9, %v445_v33  ;;  %vm461_vm13 = vcmp.ge.f32.partialorder %v2421_v49, %v449_v43  ;;  %v403_v20 = vmax.f32 %v354_v36, %v390_v25  ;;  %v436_v31 = vsel %vm432_vm0, %v3137_v41, %v3144_v56 }
 0x17f   :  { %vm2432_vm6 = vmand %vm1136_vm8, %vm457_vm9  ;;  %vm458_vm9 = vcmp.ge.f32.partialorder %v2458_v11, %v446_v14  ;;  %v407_v21 = vmax.f32 %v358_v4, %v387_v19  ;;  %v843_v43 = vsel %vm2973_vm5, %v2266_v22, %v2165_v39  ;;  %v404_v38 = vmax.f32 %v355_v10, %v386_v15  ;;  %v3152_v10 = vld [vmem:[#allocation58_spill] sm:$0xff] }
 0x180   :  { %vm2466_vm3 = vmand %vm1183_vm14, %vm461_vm13  ;;  %v3145_v28 = vmov 0.0   ;;  %vm3146_vm13 = vcmp.ge.f32.partialorder %v2439_v47, %v450_v8  ;;  %v444_v7 = vsel %vm432_vm0, %v3144_v56, %v3138_v59  ;;  %vm883_vm5 = vcmp.lt.s32.totalorder %v1104_v1, 124 }
 0x181   :  { %v2386_v24 = vpop.permute.xlu1 %822  ;;  %v2489_v25 = vsel %vm2414_vm12, 1.0, %v3145_v28  ;;  %vm2495_vm10 = vmand %vm1239_vm1, %vm3146_vm13  ;;  %v481_v46 = vsel %vm2432_vm6, 1.0, %v3145_v28  ;;  %v2507_v37 = vmax.f32 %v405_v63, %v440_v51  ;;  %v2512_v8 = vsel %vm2451_vm15, 1.0, %v3145_v28 }
 0x182   :  { %v2401_v30 = vpop.permute.xlu0 %814  ;;  %vm2518_vm12 = vmand %vm1183_vm14, %vm458_vm9  ;;  %v435_v19 = vsel %vm432_vm0, %v3119_v42, %v3152_v10  ;;  %v2529_v26 = vsel %vm2466_vm3, 1.0, %v3145_v28  ;;  %vm3153_vm6 = vcmp.ge.f32.partialorder %v2473_v23, %v447_v12  ;;  %v2535_v14 = vmax.f32 %v406_v54, %v436_v31 }
 0x183   :  { %vm471_vm15 = vmand %vm1239_vm1, %vm3153_vm6  ;;  %v443_v15 = vsel %vm432_vm0, %v3152_v10, %v3120_v55  ;;  %v847_v58 = vmax.f32 %v2131_v34, %v843_v43  ;;  %v2542_v63 = vmax.f32 %v407_v21, %v444_v7  ;;  %vm3154_vm3 = vcmp.lt.s32.totalorder %v1104_v1, 4 }
 0x184   :  { %v839_v12 = vsel %vm3154_vm3, %v2165_v39, %v2213_v13  ;;  %vm3155_vm9 = vmmov %vm3154_vm3  ;;  %v2557_v34 = vsel %vm2495_vm10, 1.0, %v3145_v28  ;;  %v2559_v55 = vmax.f32 %v403_v20, %v435_v19  ;;  %v2573_v33 = vmax.f32 %v404_v38, %v443_v15  ;;  %v3163_v19 = vld [vmem:[#allocation82_spill] sm:$0xff] }
 0x185   :  { %v860_v62 = vpop.permute.xlu1 %859  ;;  %v835_v54 = vsel %vm3155_vm9, %v2213_v13, %v2266_v22  ;;  %vm3156_vm0 = vmmov %vm3154_vm3  ;;  %v2568_v22 = vsel %vm2518_vm12, 1.0, %v3145_v28  ;;  %v2571_v13 = vsel %vm471_vm15, 1.0, %v3145_v28  ;;  %vm3157_vm10 = vcmp.lt.s32.totalorder %v1104_v1, 125 }
 0x186   :  { %v2484_v50 = vpop.permute.xlu0 %830  ;;  %v844_v39 = vsel %vm3156_vm0, %v2313_v16, %v2225_v61  ;;  %v787_v20 = vsel %vm3157_vm10, %v2137_v0, %v2150_v45  ;;  %vm3158_vm13 = vcmp.lt.s32.totalorder %v1104_v1, 3  ;;  %v848_v35 = vmax.f32 %v2139_v29, %v839_v12  ;;  %vm3159_vm6 = vmmov %vm3156_vm0  ;;  %v3169_v12 = vld [vmem:[#allocation81_spill] sm:$0xff] }
 0x187   :  { %v2583_v21 = vsel %vm3158_vm13, %v2157_v52, %v2148_v57  ;;  %v849_v56 = vmax.f32 %v2141_v3, %v835_v54  ;;  %v840_v43 = vsel %vm3159_vm6, %v2225_v61, %v2279_v53  ;;  %v850_v0 = vmax.f32 %v2146_v44, %v844_v39  ;;  %vm3161_vm3 = vmmov %vm3156_vm0 }
 0x188   :  { %v3162_v61 = vmax.f32 %v2032_v27, %v2084_v32  ;;  %v758_v10 = vmax.f32 %v2005_v60, %v2583_v21  ;;  %vm3164_vm9 = vmmov %vm3158_vm13  ;;  %v3166_v32 = vld [vmem:[#allocation83_spill] sm:$0xff] }
 0x189   :  { %v868_v42 = vpop.permute.xlu1 %867  ;;  %vm3165_vm0 = vmmov %vm3164_vm9 }
 0x18a   :  { %v888_v41 = vsel %vm883_vm5, %v860_v62, %v868_v42  ;;  %v862_v59 = vpop.permute.xlu0 %861  ;;  %v802_v4 = vmax.f32 %v3162_v61, %v787_v20 }
 0x18b   :  { %v896_v51 = vmax.f32 %v847_v58, %v888_v41  ;;  %v3167_v58 = vld [vmem:[#allocation84_spill] sm:$0xff] }
 0x18d   :  { %vm908_vm12 = vcmp.ge.f32.partialorder %v2383_v9, %v896_v51  ;;  %v876_v31 = vpop.permute.xlu1 %875  ;;  %v836_v9 = vsel %vm3161_vm3, %v2279_v53, %v2313_v16  ;;  %v740_v53 = vsel %vm3165_vm0, %v3163_v19, %v2157_v52  ;;  %v3172_v51 = vld [vmem:[#allocation85_spill] sm:$0xff] }
 0x18e   :  { %vm920_vm15 = vmand %vm1360_vm4, %vm908_vm12  ;;  %v884_v38 = vsel %vm883_vm5, %v868_v42, %v876_v31  ;;  %v892_v29 = vsel %vm883_vm5, %v876_v31, %v860_v62  ;;  %v870_v3 = vpop.permute.xlu0 %869  ;;  %v2614_v62 = vsel %vm3164_vm9, %v2148_v57, %v3163_v19  ;;  %vm3168_vm12 = vcmp.lt.s32.totalorder %v1104_v1, 125  ;;  %v2671_v19 = vld [vmem:[%s2870_s1 + $0x40] sm:$0xff] }
 0x18f   :  { %v897_v36 = vmax.f32 %v848_v35, %v884_v38  ;;  %v898_v7 = vmax.f32 %v849_v56, %v892_v29  ;;  %v889_v44 = vsel %vm883_vm5, %v862_v59, %v870_v3  ;;  %v932_v16 = vsel %vm920_vm15, 1.0, %v3145_v28  ;;  %vm3173_vm9 = vmmov %vm3168_vm12  ;;  %v2658_v29 = vld [vmem:[%s2870_s1 + $0x48] sm:$0xff] }
 0x190   :  { %v899_v15 = vmax.f32 %v850_v0, %v889_v44  ;;  %v792_v57 = vsel %vm3168_vm12, %v3167_v58, %v3166_v32  ;;  %v851_v42 = vmax.f32 %v802_v4, %v840_v43  ;;  %v852_v54 = vmax.f32 %v3169_v12, %v836_v9 }
 0x191   :  { %vm909_vm10 = vcmp.ge.f32.partialorder %v2458_v11, %v897_v36  ;;  %vm910_vm13 = vcmp.ge.f32.partialorder %v2473_v23, %v898_v7  ;;  %v2623_v27 = vpop.permute.xlu1 %816  ;;  %v2636_v11 = vld [vmem:[%s2870_s1 + $0x38] sm:$0xff]  ;;  %v3171_v23 = vld [vmem:[#allocation76_spill] sm:$0xff]  ;;  %v788_v20 = vsel %vm3173_vm9, %v3166_v32, %v3172_v51  ;;  %v944_v31 = vadd.f32 %v932_v16, %v481_v46 }
 0x192   :  { %vm921_vm6 = vmand %vm1394_vm7, %vm909_vm10  ;;  %vm911_vm3 = vcmp.ge.f32.partialorder %v2369_v2, %v899_v15  ;;  %v878_v52 = vpop.permute.xlu0 %877  ;;  %vm464_vm15 = vcmp.ge.f32.partialorder %v2636_v11, %v2559_v55  ;;  %v759_v39 = vmax.f32 %v3171_v23, %v2614_v62  ;;  %v3176_v36 = vld [vmem:[#allocation72_spill] sm:$0xff]  ;;  %v2685_v32 = vld [vmem:[%s2870_s1 + $0x58] sm:$0xff] }
 0x193   :  { %vm922_vm0 = vmand %vm1428_vm11, %vm910_vm13  ;;  %v885_v2 = vsel %vm883_vm5, %v870_v3, %v878_v52  ;;  %v893_v56 = vsel %vm883_vm5, %v878_v52, %v862_v59  ;;  %v933_v43 = vsel %vm921_vm6, 1.0, %v3145_v28  ;;  %vm466_vm13 = vcmp.ge.f32.partialorder %v2658_v29, %v2507_v37  ;;  %v3175_v3 = vld [vmem:[#allocation77_spill] sm:$0xff]  ;;  %v3177_v59 = vld [vmem:[#allocation80_spill] sm:$0xff] }
 0x194   :  { %vm923_vm10 = vmand %vm1360_vm4, %vm911_vm3  ;;  %v900_v0 = vmax.f32 %v851_v42, %v885_v2  ;;  %v901_v38 = vmax.f32 %v852_v54, %v893_v56  ;;  %v760_v9 = vmax.f32 %v3175_v3, %v740_v53  ;;  %v3178_v46 = vmax.f32 %v3176_v36, %v3177_v59  ;;  %v3181_v42 = vld [vmem:[#allocation78_spill] sm:$0xff]  ;;  %v3186_v52 = vld [vmem:[#allocation59_spill] sm:$0xff] }
 0x195   :  { %v934_v44 = vsel %vm922_vm0, 1.0, %v3145_v28  ;;  %v935_v61 = vsel %vm923_vm10, 1.0, %v3145_v28  ;;  %v833_v4 = vpop.permute.xlu1 %832  ;;  %vm3179_vm6 = vmmov %vm3173_vm9  ;;  %v3189_v3 = vld [vmem:[#allocation79_spill] sm:$0xff] }
 0x196   :  { %v804_v7 = vmax.f32 %v3178_v46, %v792_v57  ;;  %v796_v15 = vsel %vm3179_vm6, %v3172_v51, %v3167_v58  ;;  %v947_v53 = vadd.f32 %v935_v61, %v2489_v25  ;;  %vm912_vm3 = vcmp.ge.f32.partialorder %v2421_v49, %v900_v0  ;;  %v825_v16 = vpop.permute.xlu0 %824  ;;  %v3180_v57 = vld [vmem:[#allocation74_spill] sm:$0xff]  ;;  %v3183_v58 = vld [vmem:[#allocation20_spill] sm:$0xff]  ;;  %vm3184_vm10 = vmmov %vm3179_vm6 }
 0x197   :  { %vm913_vm9 = vcmp.ge.f32.partialorder %v2439_v47, %v901_v38  ;;  %v3182_v12 = vmax.f32 %v3180_v57, %v3181_v42  ;;  %v797_v49 = vsel %vm3184_vm10, %v2343_v6, %v3183_v58  ;;  %vm3185_vm6 = vcmp.lt.s32.totalorder %v1104_v1, 4  ;;  %vm924_vm12 = vmand %vm1394_vm7, %vm912_vm3  ;;  %v3188_v38 = vld [vmem:[#allocation75_spill] sm:$0xff]  ;;  %v2721_v46 = vld [vmem:[%s2870_s1 + $0x50] sm:$0xff] }
 0x198   :  { %v845_v47 = vsel %vm3185_vm6, %v2484_v50, %v2401_v30  ;;  %v945_v25 = vadd.f32 %v933_v43, %v2568_v22  ;;  %v957_v51 = vmul.f32 %v944_v31, %v3186_v52  ;;  %v946_v2 = vadd.f32 %v934_v44, %v2571_v13  ;;  %vm925_vm0 = vmand %vm1428_vm11, %vm913_vm9  ;;  %v3193_v57 = vld [vmem:[#allocation60_spill] sm:$0xff] }
 0x199   :  { %v805_v54 = vmax.f32 %v3182_v12, %v788_v20  ;;  %v3187_v20 = vld [vmem:[#allocation61_spill] sm:$0xff]  ;;  %v936_v0 = vsel %vm924_vm12, 1.0, %v3145_v28  ;;  %v3190_v36 = vmax.f32 %v3188_v38, %v3189_v3  ;;  %vm3191_vm10 = vmmov %vm3185_vm6  ;;  %v937_v31 = vsel %vm925_vm0, 1.0, %v3145_v28  ;;  %v872_v43 = vpop.permute.xlu1 %871  ;;  %v3194_v12 = vld [vmem:[#allocation62_spill] sm:$0xff] }
 0x19a   :  { %v960_v56 = vmul.f32 %v947_v53, %v3187_v20  ;;  %v841_v22 = vsel %vm3191_vm10, %v2401_v30, %v2386_v24  ;;  %v948_v13 = vadd.f32 %v936_v0, %v2529_v26  ;;  %vm467_vm12 = vcmp.ge.f32.partialorder %v2721_v46, %v2535_v14  ;;  %vm3192_vm3 = vmmov %vm3185_vm6  ;;  %v864_v53 = vpop.permute.xlu0 %863  ;;  %v3196_v38 = vld [vmem:[#allocation63_spill] sm:$0xff]  ;;  %v3214_v14 = vld [vmem:[#allocation66_spill] sm:$0xff] }
 0x19b   :  { %v806_v59 = vmax.f32 %v3190_v36, %v796_v15  ;;  %v837_v44 = vsel %vm3192_vm3, %v2386_v24, %v2484_v50  ;;  %v853_v61 = vmax.f32 %v804_v7, %v845_v47  ;;  %v949_v15 = vadd.f32 %v937_v31, %v2557_v34  ;;  %v3197_v50 = vld [vmem:[#allocation64_spill] sm:$0xff]  ;;  %vm2749_vm6 = vmand %vm1183_vm14, %vm464_vm15 }
 0x19c   :  { %v969_v30 = vadd.f32 %v960_v56, %v957_v51  ;;  %v809_v26 = vmax.f32 %v760_v9, %v797_v49  ;;  %v958_v42 = vmul.f32 %v945_v25, %v3193_v57  ;;  %v961_v52 = vmul.f32 %v948_v13, %v3194_v12  ;;  %vm3201_vm10 = vmmov %vm3192_vm3 }
 0x19d   :  { %v890_v20 = vsel %vm883_vm5, %v864_v53, %v872_v43  ;;  %vm3195_vm9 = vcmp.lt.s32.totalorder %v1104_v1, 125  ;;  %v959_v24 = vmul.f32 %v946_v2, %v3196_v38  ;;  %v962_v7 = vmul.f32 %v949_v15, %v3197_v50  ;;  %v866_v51 = vpop.permute.xlu1 %865  ;;  %vm3202_vm15 = vmmov %vm3192_vm3  ;;  %v3216_v38 = vld [vmem:[#allocation68_spill] sm:$0xff] }
 0x19e   :  { %v793_v0 = vsel %vm3195_vm9, %v3183_v58, %v2353_v48  ;;  %v902_v47 = vmax.f32 %v853_v61, %v890_v20  ;;  %vm3198_vm0 = vmmov %vm3195_vm9  ;;  %v854_v9 = vmax.f32 %v805_v54, %v841_v22  ;;  %v855_v49 = vmax.f32 %v806_v59, %v837_v44 }
 0x19f   :  { %v789_v34 = vsel %vm3198_vm0, %v2353_v48, %v2343_v6  ;;  %v978_v25 = vadd.f32 %v961_v52, %v958_v42  ;;  %v987_v2 = vadd.f32 %v962_v7, %v959_v24  ;;  %v846_v56 = vsel %vm3201_vm10, %v833_v4, %v2623_v27  ;;  %v880_v48 = vpop.permute.xlu0 %879  ;;  %vm2776_vm10 = vmand %vm1136_vm8, %vm466_vm13  ;;  %v3217_v7 = vld [vmem:[#allocation69_spill] sm:$0xff] }
 0x1a0   :  { %v838_v6 = vsel %vm3192_vm3, %v825_v16, %v833_v4  ;;  %vm914_vm9 = vcmp.ge.f32.partialorder %v2398_v18, %v902_v47  ;;  %v807_v55 = vmax.f32 %v758_v10, %v793_v0  ;;  %v842_v54 = vsel %vm3202_vm15, %v2623_v27, %v825_v16 }
 0x1a1   :  { %vm926_vm0 = vmand %vm1360_vm4, %vm914_vm9  ;;  %v886_v3 = vsel %vm883_vm5, %v872_v43, %v880_v48  ;;  %v894_v4 = vsel %vm883_vm5, %v880_v48, %v864_v53  ;;  %v808_v18 = vmax.f32 %v759_v39, %v789_v34  ;;  %vm3205_vm3 = vcmp.ge.f32.partialorder %v2671_v19, %v2573_v33  ;;  %v882_v39 = vpop.permute.xlu1 %881 }
 0x1a2   :  { %v938_v21 = vsel %vm926_vm0, 1.0, %v3145_v28  ;;  %v903_v10 = vmax.f32 %v854_v9, %v886_v3  ;;  %v904_v27 = vmax.f32 %v855_v49, %v894_v4  ;;  %vm2789_vm9 = vmand %vm1239_vm1, %vm3205_vm3  ;;  %v488_v5 = vsel %vm2749_vm6, 1.0, %v3145_v28  ;;  %v3218_v9 = vld [vmem:[#allocation70_spill] sm:$0xff] }
 0x1a3   :  { %v856_v16 = vmax.f32 %v807_v55, %v846_v56  ;;  %v858_v62 = vmax.f32 %v809_v26, %v838_v6  ;;  %v950_v23 = vadd.f32 %v938_v21, %v2512_v8  ;;  %vm3208_vm8 = vcmp.ge.f32.partialorder %v2685_v32, %v2542_v63  ;;  %v874_v22 = vpop.permute.xlu0 %873  ;;  %v3211_v8 = vld [vmem:[#allocation65_spill] sm:$0xff]  ;;  %vm2828_vm3 = vmand %vm1183_vm14, %vm467_vm12 }
 0x1a4   :  { %vm2802_vm13 = vmand %vm1239_vm1, %vm3208_vm8  ;;  %v857_v36 = vmax.f32 %v808_v18, %v842_v54  ;;  %vm915_vm15 = vcmp.ge.f32.partialorder %v2636_v11, %v903_v10  ;;  %vm916_vm0 = vcmp.ge.f32.partialorder %v2671_v19, %v904_v27  ;;  %v895_v59 = vsel %vm883_vm5, %v882_v39, %v866_v51 }
 0x1a5   :  { %v963_v31 = vmul.f32 %v950_v23, %v3211_v8  ;;  %vm927_vm6 = vmand %vm1394_vm7, %vm915_vm15  ;;  %v907_v63 = vmax.f32 %v858_v62, %v895_v59  ;;  %v887_v40 = vsel %vm883_vm5, %v874_v22, %v882_v39  ;;  %v891_v13 = vsel %vm883_vm5, %v866_v51, %v874_v22  ;;  %v3219_v62 = vld [vmem:[#allocation73_spill] sm:$0xff] }
 0x1a6   :  { %v489_v11 = vsel %vm2789_vm9, 1.0, %v3145_v28  ;;  %vm928_vm1 = vmand %vm1428_vm11, %vm916_vm0  ;;  %v939_v19 = vsel %vm927_vm6, 1.0, %v3145_v28  ;;  %v905_v43 = vmax.f32 %v856_v16, %v891_v13  ;;  %v906_v44 = vmax.f32 %v857_v36, %v887_v40  ;;  %v956_v36 = vld [vmem:[%s2873_s3] sm:$0x7] }
 0x1a7   :  { %v970_v1 = vadd.f32 %v969_v30, %v963_v31  ;;  %v940_v15 = vsel %vm928_vm1, 1.0, %v3145_v28  ;;  %v951_v53 = vadd.f32 %v939_v19, %v488_v5  ;;  %vm919_vm5 = vcmp.ge.f32.partialorder %v2685_v32, %v907_v63  ;;  %v3215_v32 = vld [vmem:[#allocation67_spill] sm:$0xff] }
 0x1a8   :  { %v952_v26 = vadd.f32 %v940_v15, %v489_v11  ;;  %vm931_vm9 = vmand %vm1428_vm11, %vm919_vm5  ;;  %vm917_vm8 = vcmp.ge.f32.partialorder %v2658_v29, %v905_v43  ;;  %vm918_vm15 = vcmp.ge.f32.partialorder %v2721_v46, %v906_v44  ;;  %v492_v17 = vsel %vm2802_vm13, 1.0, %v3145_v28 }
 0x1a9   :  { %v964_v57 = vmul.f32 %v951_v53, %v3214_v14  ;;  %v943_v30 = vsel %vm931_vm9, 1.0, %v3145_v28  ;;  %vm929_vm14 = vmand %vm1360_vm4, %vm917_vm8  ;;  %v490_v35 = vsel %vm2776_vm10, 1.0, %v3145_v28  ;;  %v491_v12 = vsel %vm2828_vm3, 1.0, %v3145_v28 }
 0x1aa   :  { %v965_v42 = vmul.f32 %v952_v26, %v3215_v32  ;;  %v955_v29 = vadd.f32 %v943_v30, %v492_v17  ;;  %vm930_vm11 = vmand %vm1394_vm7, %vm918_vm15  ;;  %v941_v46 = vsel %vm929_vm14, 1.0, %v3145_v28 }
 0x1ab   :  { %v979_v52 = vadd.f32 %v978_v25, %v964_v57  ;;  %v942_v45 = vsel %vm930_vm11, 1.0, %v3145_v28  ;;  %v953_v20 = vadd.f32 %v941_v46, %v490_v35 }
 0x1ac   :  { %v988_v0 = vadd.f32 %v987_v2, %v965_v42  ;;  %v968_v24 = vmul.f32 %v955_v29, %v3216_v38  ;;  %v954_v50 = vadd.f32 %v942_v45, %v491_v12 }
 0x1ad   :  { %v966_v47 = vmul.f32 %v953_v20, %v3217_v7 }
 0x1ae   :  { %v989_v34 = vadd.f32 %v988_v0, %v968_v24  ;;  %v967_v41 = vmul.f32 %v954_v50, %v3218_v9 }
 0x1af   :  { %v971_v49 = vadd.f32 %v970_v1, %v966_v47 }
 0x1b0   :  { %v990_v51 = vrot.slane %v989_v34, 4  ;;  %v980_v58 = vadd.f32 %v979_v52, %v967_v41 }
 0x1b1   :  { %v972_v56 = vrot.slane %v971_v49, 4 }
 0x1b2   :  { %v991_v6 = vadd.f32 %v990_v51, %v989_v34  ;;  %v981_v48 = vrot.slane %v980_v58, 4 }
 0x1b3   :  { %v973_v55 = vadd.f32 %v972_v56, %v971_v49 }
 0x1b4   :  { %v992_v25 = vrot.slane %v991_v6, 2  ;;  %v982_v54 = vadd.f32 %v981_v48, %v980_v58 }
 0x1b5   :  { %v974_v28 = vrot.slane %v973_v55, 2 }
 0x1b6   :  { %v993_v3 = vadd.f32 %v992_v25, %v991_v6  ;;  %v983_v2 = vrot.slane %v982_v54, 2 }
 0x1b7   :  { %v975_v4 = vadd.f32 %v974_v28, %v973_v55 }
 0x1b8   :  { %v994_v60 = vrot.slane %v993_v3, 1  ;;  %v984_v18 = vadd.f32 %v983_v2, %v982_v54 }
 0x1b9   :  { %v976_v21 = vrot.slane %v975_v4, 1 }
 0x1ba   :  { %v985_v10 = vrot.slane %v984_v18, 1  ;;  %v995_v37 = vadd.f32 %v994_v60, %v993_v3 }
 0x1bb   :  { %v977_v27 = vadd.f32 %v976_v21, %v975_v4 }
 0x1bc   :  { %v986_v5 = vadd.f32 %v985_v10, %v984_v18  ;;  %v1013_v23 = vrot.slane %v995_v37, %v3219_v62 }
 0x1be   :  { %v999_v16 = vcombine.low %v977_v27, %v986_v5 }
 0x1c0   :  { %v1006_v39 = vrot.slane %v999_v16, %v3219_v62 }
 0x1c2   :  { %v1014_v33 = vcombine.low %v1006_v39, %v1013_v23 }
 0x1c4   :  { %v1021_v59 = vrot.slane %v1014_v33, %v3219_v62 }
 0x1c6   :  { %v1023_v22 = vadd.f32 %v1021_v59, %v956_v36 }
 0x1c8   :  { %1024 = vst.msk [vmem:[%s2873_s3] sm:$0x7] %vm2001_vm2, %v1023_v22 }

</bundles_post_ra>
